<compile_context>
chip_gen: v7x
topology: tpu7x:2x2x1
jax: 0.10.0
libtpu: 0.0.40
codegen_flags: <defaults>
</compile_context>

<pallas_src>
import functools

import numpy as np
import jax
import jax.numpy as jnp
from jax import lax
from jax.experimental import pallas as pl
from jax.experimental.pallas import tpu as pltpu


# ----------------------------------------------------------------------------
# Parameter / constant construction (glue, deterministic, mirrors __init__)
# ----------------------------------------------------------------------------
def _round_up(x, m):
    return ((x + m - 1) // m) * m


def _build_filters(T, fs, f_mean, bandwidth, shape, group_delay,
                   clamp_f_mean=(1.0, 45.0)):
    """GeneralizedGaussianFilter.construct_filters() in numpy -> (K, Fq) re/im."""
    n_freq = T // 2 + 1
    nyq = fs / 2.0
    n_range = np.concatenate(
        [np.fft.fftfreq(T, d=1.0 / fs)[: T // 2], [nyq]]) / nyq        # (F,)

    fm = np.clip(np.asarray(f_mean, np.float64) / nyq,
                 clamp_f_mean[0] / nyq, clamp_f_mean[1] / nyq)          # (K,)
    bw = np.clip(np.asarray(bandwidth, np.float64) / nyq, 1.0 / nyq, 1.0)
    sh = np.clip(np.asarray(shape, np.float64), 2.0, 3.0)
    gd = np.asarray(group_delay, np.float64) / 1000.0

    shp = sh * 8.0 - 14.0                                               # (K,)
    scale = bw / (2.0 * np.log(2.0) ** (1.0 / shp))                     # (K,)
    mag = np.exp(-(((np.abs(n_range[None, :] - fm[:, None]) + 1e-8)
                    / scale[:, None]) ** shp[:, None]))                 # (K,F)
    mag = mag / mag.max(axis=-1, keepdims=True)

    f = np.linspace(0.0, fs, n_freq)[None, :]                           # (1,F)
    pha = -gd[:, None] * f * np.pi                                      # (K,F)
    filt_real = (mag * np.cos(pha)).astype(np.float32)
    filt_imag = (mag * np.sin(pha)).astype(np.float32)
    return filt_real, filt_imag


def _dft_matrices(T):
    """Real DFT matrices so that rfft(x) = (x @ C) + 1j * (x @ S)."""
    n_freq = T // 2 + 1
    t = np.arange(T, dtype=np.float64)[:, None]
    f = np.arange(n_freq, dtype=np.float64)[None, :]
    ang = 2.0 * np.pi * t * f / T
    return np.cos(ang).astype(np.float32), (-np.sin(ang)).astype(np.float32)


def init_params(in_shape, n_out, key, matmul_dtype=jnp.bfloat16):
    """Builds kernel constants.  matmul_dtype=bf16 (default) pre-casts the DFT
    matrix on the host (native MXU path on all generations); use f32 if PLV
    phase tolerance for low-amplitude bins has not been validated."""
    E, T = in_shape
    fs = 128
    f_mean = (23.0, 23.0)
    bandwidth = (44.0, 44.0)
    shape = (2.0, 2.0)
    group_delay = (20.0, 20.0)
    K = len(f_mean)

    Fq = T // 2 + 1
    Fp = _round_up(Fq, 128)                  # lane-padded freq axis
    E_pad = _round_up(max(E, 8), 8)          # sublane-padded electrode axis

    filt_real, filt_imag = _build_filters(T, fs, f_mean, bandwidth, shape,
                                          group_delay)                  # (K,Fq)
    dft_cos, dft_sin = _dft_matrices(T)                                 # (T,Fq)

    # Single concatenated DFT RHS [cos | -sin], zero-padded to (T, 2*Fp),
    # pre-cast to the matmul dtype on the host (no per-step in-kernel cast).
    cs = np.zeros((T, 2 * Fp), np.float32)
    cs[:, :Fq] = dft_cos
    cs[:, Fp:Fp + Fq] = dft_sin

    # Filters (K, Fp), f32 (small, elementwise on the VPU).  Padded freq bins
    # have zero weight so they stay exactly zero downstream.
    fr = np.zeros((K, Fp), np.float32)
    fi = np.zeros((K, Fp), np.float32)
    fr[:, :Fq] = filt_real
    fi[:, :Fq] = filt_imag

    # Upper-triangle selection matrix in the E_pad*E_pad Gram layout, stored
    # as exact 0/1 bf16 (half the DMA/VMEM); the 1/n_freq PLV normalization is
    # applied as a scalar inside the kernel.  Padded electrodes / padded
    # feature columns are exactly zero.
    iu, ju = np.triu_indices(E, k=1)
    n_pairs = int(iu.shape[0])
    npad = _round_up(max(n_pairs, 1), 128)
    sel = np.zeros((E_pad * E_pad, npad), np.float32)
    sel[iu * E_pad + ju, np.arange(n_pairs)] = 1.0

    # fc weights: built in the module's feature order (pair-major: p*K + k,
    # matching torch.triu_indices + reshape), then permuted / zero-padded into
    # the kernel feature layout (row = k*npad + p).  BatchNorm(affine=False)
    # is permutation-equivariant so the forward pass is unchanged.
    n_feat = K * n_pairs
    bound = 1.0 / np.sqrt(n_feat)            # PyTorch Linear default init bound
    w_module = jax.random.uniform(key, (n_feat, n_out), jnp.float32,
                                  -bound, bound)
    k_idx = np.repeat(np.arange(K), n_pairs)
    p_idx = np.tile(np.arange(n_pairs), K)
    rows = k_idx * npad + p_idx                      # kernel feature position
    mod_idx = p_idx * K + k_idx                      # module feature position
    fc_w = jnp.zeros((K * npad, n_out), jnp.float32)
    fc_w = fc_w.at[rows].set(w_module[mod_idx])
    fc_b = jnp.zeros((1, n_out), jnp.float32)        # nn.init.zeros_(bias)

    return dict(dft_cs=jnp.asarray(cs, matmul_dtype),
                filt_real=jnp.asarray(fr), filt_imag=jnp.asarray(fi),
                sel=jnp.asarray(sel, jnp.bfloat16),
                fc_w=fc_w, fc_b=fc_b)


# ----------------------------------------------------------------------------
# Kernel: DFT + filter + PLV + triu selection  (one batch block per grid step)
# ----------------------------------------------------------------------------
def _plv_kernel(x_ref, cs_ref, fr_ref, fi_ref, sel_ref, out_ref, *,
                batch_block, e_pad, n_freq, gram_dtype):
    Fp = cs_ref.shape[1] // 2
    K = fr_ref.shape[0]
    npad = sel_ref.shape[-1]

    # rfft as a single MXU matmul against the resident [cos | -sin] matrix.
    # Operands were pre-cast on the host, so this runs at native MXU rate.
    spec = jnp.dot(x_ref[...], cs_ref[...],
                   preferred_element_type=jnp.float32)          # (Bb*Ep, 2*Fp)
    xre = spec[:, :Fp]
    xim = spec[:, Fp:]

    fr = fr_ref[...]
    fi = fi_ref[...]
    sel = sel_ref[...]
    inv_nfreq = jnp.float32(1.0 / n_freq)
    dims = (((2,), (2,)), ((0,), (0,)))

    for k in range(K):                       # static, tiny filter loop (K=2)
        # Elementwise multiply on the real view of the spectrum -- exactly
        # what the torch module computes (`x * self.filters` after
        # view_as_real); this is intentionally NOT a complex multiply.
        yre = xre * fr[k:k + 1, :]
        yim = xim * fi[k:k + 1, :]

        # Phase-only normalization (EUP rsqrt).  Padded freq bins / padded
        # electrodes have yre = yim = 0 and stay exactly zero here.
        inv_amp = lax.rsqrt(yre * yre + yim * yim + 1e-12)
        u = (yre * inv_amp).astype(gram_dtype)
        v = (yim * inv_amp).astype(gram_dtype)

        # Layout-clean 2D -> 3D view: e_pad % 8 == 0 so the row split lands on
        # whole sublane tiles (the B*E fold itself happens in the wrapper).
        u3 = u.reshape(batch_block, e_pad, Fp)
        v3 = v.reshape(batch_block, e_pad, Fp)

        # Two accumulated batched ExE Grams (no concat, no quadrant slices).
        # If profiling ever shows these dominate (small E, large Fq), pack
        # several (b, k) Grams into the MXU M dim instead.
        re_g = (lax.dot_general(u3, u3, dims, preferred_element_type=jnp.float32)
                + lax.dot_general(v3, v3, dims, preferred_element_type=jnp.float32))
        im_g = (lax.dot_general(v3, u3, dims, preferred_element_type=jnp.float32)
                - lax.dot_general(u3, v3, dims, preferred_element_type=jnp.float32))

        # Lane-dense triu selection against the resident 0/1 bf16 matrix.
        # Each output column accumulates exactly one nonzero product, so the
        # only rounding is the bf16 cast of re_g/im_g (<= 2^-9 relative).
        re_f = re_g.reshape(batch_block, e_pad * e_pad).astype(jnp.bfloat16)
        im_f = im_g.reshape(batch_block, e_pad * e_pad).astype(jnp.bfloat16)
        re_s = jnp.dot(re_f, sel, preferred_element_type=jnp.float32)
        im_s = jnp.dot(im_f, sel, preferred_element_type=jnp.float32)

        # PLV = |mean_f exp(i*dphi)|; the 1/n_freq is a scalar multiply here
        # (not baked into sel).  Full 128-lane-wide store per filter row.
        out_ref[:, k, :] = jnp.sqrt(re_s * re_s + im_s * im_s) * inv_nfreq


# ----------------------------------------------------------------------------
# Wrapper
# ----------------------------------------------------------------------------
def _vmem_capacity_bytes():
    try:
        return int(pltpu.get_tpu_info().vmem_capacity_bytes)
    except Exception:
        return 64 * 1024 * 1024          # conservative (v7x per-TensorCore)


def _is_multi_tc():
    """True on chips with >1 TensorCore (v7x, and megacore v4/v5p)."""
    try:
        kind = jax.devices()[0].device_kind.lower()
    except Exception:
        return False
    return any(t in kind for t in ("v7", "v4", "v5p"))


def _pick_batch_block(B, per_batch_bytes, const_bytes, vmem_budget, multi_tc):
    """Largest batch block that fits the VMEM budget (maximizes the DFT matmul
    M dim = Bb*E_pad).  Only on 2-TensorCore chips do we prefer >=2 (and even)
    grid steps so the 'parallel' axis shards evenly; on single-TC v5e/v6e the
    largest fitting Bb wins even if that means a single grid step."""
    divisors = [d for d in range(1, B + 1) if B % d == 0]
    fits = [d for d in divisors if const_bytes + d * per_batch_bytes <= vmem_budget]
    if not fits:
        fits = [1]
    if multi_tc and B > 1:
        even = [d for d in fits if (B // d) >= 2 and (B // d) % 2 == 0]
        pool = even or [d for d in fits if (B // d) >= 2] or fits
        return max(pool)
    return max(fits)


def _const_spec(shape, single_buffer):
    """BlockSpec for an operand fetched once (constant index_map); request a
    single VMEM buffer (no double-buffer waste) when supported."""
    index_map = lambda b, _nd=len(shape): (0,) * _nd
    if single_buffer:
        try:
            return pl.BlockSpec(shape, index_map, pipeline_mode=pl.Buffered(1))
        except Exception:
            pass
    return pl.BlockSpec(shape, index_map)


def plv_eegminer_forward(x, params, gram_dtype=jnp.float32):
    """x: (batch, electrodes, time) float32.  gram_dtype=bf16 halves the
    largest per-step intermediates; keep f32 until PLV tolerance is checked."""
    B, E, T = x.shape
    cs = params["dft_cs"]                               # (T, 2*Fp)
    fr, fi = params["filt_real"], params["filt_imag"]   # (K, Fp) f32
    sel = params["sel"]                                  # (E_pad^2, npad) bf16
    K, Fp = fr.shape
    npad = sel.shape[1]
    Fq = T // 2 + 1
    E_pad = _round_up(max(E, 8), 8)
    assert sel.shape[0] == E_pad * E_pad

    # Host-side: zero-pad electrodes to a sublane multiple, fold
    # (B, E_pad, T) -> (B*E_pad, T) and pre-cast to the DFT matmul dtype.
    # Cheap XLA ops; removes all per-step in-kernel relayout/cast traffic.
    xp = x if E_pad == E else jnp.pad(x, ((0, 0), (0, E_pad - E), (0, 0)))
    x2d = xp.reshape(B * E_pad, T).astype(cs.dtype)

    multi_tc = _is_multi_tc()
    vmem_cap = _vmem_capacity_bytes()

    x_item = jnp.dtype(cs.dtype).itemsize
    g_item = jnp.dtype(gram_dtype).itemsize
    per_batch = (2 * E_pad * T * x_item                 # x block (double-buf)
                 + 2 * K * npad * 4                     # out block (double-buf)
                 + E_pad * 2 * Fp * 4                   # spectrum (f32)
                 + 4 * E_pad * Fp * 4                   # yre/yim/inv_amp work
                 + 2 * E_pad * Fp * g_item              # u, v
                 + 4 * E_pad * E_pad * 4 + 4 * npad * 4)  # Grams + features
    const_bytes = (T * 2 * Fp * x_item                  # DFT matrix
                   + 2 * K * Fp * 4                     # filters
                   + E_pad * E_pad * npad * 2)          # selection (bf16)

    Bb = _pick_batch_block(B, per_batch, const_bytes,
                           int(0.7 * vmem_cap), multi_tc)
    nb = B // Bb
    vmem_limit = int(min(vmem_cap,
                         max(32 * 1024 * 1024,
                             const_bytes + Bb * per_batch + 8 * 1024 * 1024)))

    kernel = functools.partial(_plv_kernel, batch_block=Bb, e_pad=E_pad,
                               n_freq=Fq, gram_dtype=gram_dtype)

    def _call(single_buffer):
        return pl.pallas_call(
            kernel,
            out_shape=jax.ShapeDtypeStruct((B, K, npad), jnp.float32),
            grid=(nb,),
            in_specs=[
                pl.BlockSpec((Bb * E_pad, T), lambda b: (b, 0)),
                _const_spec((T, 2 * Fp), single_buffer),
                _const_spec((K, Fp), single_buffer),
                _const_spec((K, Fp), single_buffer),
                _const_spec((E_pad * E_pad, npad), single_buffer),
            ],
            out_specs=pl.BlockSpec((Bb, K, npad), lambda b: (b, 0, 0)),
            compiler_params=pltpu.CompilerParams(
                dimension_semantics=("parallel",),
                vmem_limit_bytes=vmem_limit),
        )(x2d, cs, fr, fi, sel)

    try:
        plv_feats = _call(single_buffer=True)
    except Exception:
        # Fallback for JAX builds that reject single-buffered pipeline_mode.
        plv_feats = _call(single_buffer=False)

    # Tiny head left to XLA (per perf review): BatchNorm1d train-mode batch
    # stats (affine=False, biased variance, eps=1e-5) + Linear + sigmoid.
    # Padded feature columns are exactly zero and map to zero fc rows, so they
    # contribute nothing.  TODO(synk): eval-mode running-stats BN not modeled.
    feats = plv_feats.reshape(B, K * npad)
    mean = jnp.mean(feats, axis=0, keepdims=True)
    var = jnp.mean((feats - mean) ** 2, axis=0, keepdims=True)
    xn = (feats - mean) * lax.rsqrt(var + 1e-5)
    return jax.nn.sigmoid(xn @ params["fc_w"] + params["fc_b"])


if __name__ == "__main__":
    key = jax.random.PRNGKey(0)
    k_x, k_w = jax.random.split(key)

    in_shape = (4, 16)      # (electrodes, time)
    n_out = 3
    batch = 2

    x = jax.random.normal(k_x, (batch, in_shape[0], in_shape[1]), jnp.float32)
    params = init_params(in_shape, n_out, k_w)

    out = plv_eegminer_forward(x, params)
    out = jax.block_until_ready(out)

    assert out.shape == (batch, n_out)
    assert bool(jnp.all(jnp.isfinite(out)))
    print("KERNEL_OK")
</pallas_src>

<mosaic_0001>
module attributes {stable_mosaic.version = 11 : i64} {
  func.func @_plv_kernel(%arg0: i32, %arg1: memref<16x16xbf16, #tpu.memory_space<vmem>>, %arg2: memref<16x256xbf16, #tpu.memory_space<vmem>>, %arg3: memref<2x128xf32, #tpu.memory_space<vmem>>, %arg4: memref<2x128xf32, #tpu.memory_space<vmem>>, %arg5: memref<64x128xbf16, #tpu.memory_space<vmem>>, %arg6: memref<2x2x128xf32, #tpu.memory_space<vmem>>) attributes {dimension_semantics = [#tpu.dimension_semantics<parallel>], iteration_bounds = array<i64: 1>, scalar_prefetch = 0 : i64, scratch_operands = 0 : i64, tpu.core_type = #tpu.core_type<tc>, window_params = [{transform_indices = @transform_0, window_bounds = array<i64: 16, 16>}, {pipeline_mode = #tpu.pipeline_mode<synchronous>, transform_indices = @transform_1, window_bounds = array<i64: 16, 256>}, {pipeline_mode = #tpu.pipeline_mode<synchronous>, transform_indices = @transform_2, window_bounds = array<i64: 2, 128>}, {pipeline_mode = #tpu.pipeline_mode<synchronous>, transform_indices = @transform_3, window_bounds = array<i64: 2, 128>}, {pipeline_mode = #tpu.pipeline_mode<synchronous>, transform_indices = @transform_4, window_bounds = array<i64: 64, 128>}, {transform_indices = @transform_5, window_bounds = array<i64: 2, 2, 128>}]} {
    %c0 = arith.constant 0 : index
    %c0_0 = arith.constant 0 : index
    %0 = vector.load %arg1[%c0, %c0_0] : memref<16x16xbf16, #tpu.memory_space<vmem>>, vector<16x16xbf16>
    %c0_1 = arith.constant 0 : index
    %c0_2 = arith.constant 0 : index
    %1 = vector.load %arg2[%c0_1, %c0_2] : memref<16x256xbf16, #tpu.memory_space<vmem>>, vector<16x256xbf16>
    %cst = arith.constant dense<0.000000e+00> : vector<16x256xf32>
    %2 = tpu.matmul %0, %1, %cst {dimension_numbers = #tpu.dot_dimension_numbers<[1], [0], [0], [1], [0, 0, 1, 1], [], []>} : vector<16x16xbf16>, vector<16x256xbf16>, vector<16x256xf32> -> vector<16x256xf32>
    %3 = vector.extract_strided_slice %2 {offsets = [0, 0], sizes = [16, 128], strides = [1, 1]} : vector<16x256xf32> to vector<16x128xf32>
    %4 = vector.extract_strided_slice %2 {offsets = [0, 128], sizes = [16, 128], strides = [1, 1]} : vector<16x256xf32> to vector<16x128xf32>
    %c0_3 = arith.constant 0 : index
    %c0_4 = arith.constant 0 : index
    %5 = vector.load %arg3[%c0_3, %c0_4] : memref<2x128xf32, #tpu.memory_space<vmem>>, vector<2x128xf32>
    %c0_5 = arith.constant 0 : index
    %c0_6 = arith.constant 0 : index
    %6 = vector.load %arg4[%c0_5, %c0_6] : memref<2x128xf32, #tpu.memory_space<vmem>>, vector<2x128xf32>
    %c0_7 = arith.constant 0 : index
    %c0_8 = arith.constant 0 : index
    %7 = vector.load %arg5[%c0_7, %c0_8] : memref<64x128xbf16, #tpu.memory_space<vmem>>, vector<64x128xbf16>
    %8 = vector.extract_strided_slice %5 {offsets = [0, 0], sizes = [1, 128], strides = [1, 1]} : vector<2x128xf32> to vector<1x128xf32>
    %9 = vector.broadcast %8 : vector<1x128xf32> to vector<16x128xf32>
    %10 = arith.mulf %3, %9 : vector<16x128xf32>
    %11 = vector.extract_strided_slice %6 {offsets = [0, 0], sizes = [1, 128], strides = [1, 1]} : vector<2x128xf32> to vector<1x128xf32>
    %12 = vector.broadcast %11 : vector<1x128xf32> to vector<16x128xf32>
    %13 = arith.mulf %4, %12 : vector<16x128xf32>
    %14 = arith.mulf %10, %10 : vector<16x128xf32>
    %15 = arith.mulf %13, %13 : vector<16x128xf32>
    %16 = arith.addf %14, %15 : vector<16x128xf32>
    %cst_9 = arith.constant 9.99999996E-13 : f32
    %17 = vector.broadcast %cst_9 : f32 to vector<16x128xf32>
    %18 = arith.addf %16, %17 : vector<16x128xf32>
    %19 = math.rsqrt %18 : vector<16x128xf32>
    %20 = arith.mulf %10, %19 : vector<16x128xf32>
    %21 = arith.mulf %13, %19 : vector<16x128xf32>
    %22 = vector.shape_cast %20 : vector<16x128xf32> to vector<2x8x128xf32>
    %23 = vector.shape_cast %21 : vector<16x128xf32> to vector<2x8x128xf32>
    %cst_10 = arith.constant dense<0.000000e+00> : vector<2x8x8xf32>
    %24 = tpu.matmul %22, %22, %cst_10 {dimension_numbers = #tpu.dot_dimension_numbers<[2], [2], [1], [1], [0, 0, 0, 1, 1, 1], [0], [0]>} : vector<2x8x128xf32>, vector<2x8x128xf32>, vector<2x8x8xf32> -> vector<2x8x8xf32>
    %cst_11 = arith.constant dense<0.000000e+00> : vector<2x8x8xf32>
    %25 = tpu.matmul %23, %23, %cst_11 {dimension_numbers = #tpu.dot_dimension_numbers<[2], [2], [1], [1], [0, 0, 0, 1, 1, 1], [0], [0]>} : vector<2x8x128xf32>, vector<2x8x128xf32>, vector<2x8x8xf32> -> vector<2x8x8xf32>
    %26 = arith.addf %24, %25 : vector<2x8x8xf32>
    %cst_12 = arith.constant dense<0.000000e+00> : vector<2x8x8xf32>
    %27 = tpu.matmul %23, %22, %cst_12 {dimension_numbers = #tpu.dot_dimension_numbers<[2], [2], [1], [1], [0, 0, 0, 1, 1, 1], [0], [0]>} : vector<2x8x128xf32>, vector<2x8x128xf32>, vector<2x8x8xf32> -> vector<2x8x8xf32>
    %cst_13 = arith.constant dense<0.000000e+00> : vector<2x8x8xf32>
    %28 = tpu.matmul %22, %23, %cst_13 {dimension_numbers = #tpu.dot_dimension_numbers<[2], [2], [1], [1], [0, 0, 0, 1, 1, 1], [0], [0]>} : vector<2x8x128xf32>, vector<2x8x128xf32>, vector<2x8x8xf32> -> vector<2x8x8xf32>
    %29 = arith.subf %27, %28 : vector<2x8x8xf32>
    %30 = vector.shape_cast %26 : vector<2x8x8xf32> to vector<2x64xf32>
    %31 = arith.truncf %30 : vector<2x64xf32> to vector<2x64xbf16>
    %32 = vector.shape_cast %29 : vector<2x8x8xf32> to vector<2x64xf32>
    %33 = arith.truncf %32 : vector<2x64xf32> to vector<2x64xbf16>
    %cst_14 = arith.constant dense<0.000000e+00> : vector<2x128xf32>
    %34 = tpu.matmul %31, %7, %cst_14 {dimension_numbers = #tpu.dot_dimension_numbers<[1], [0], [0], [1], [0, 0, 1, 1], [], []>} : vector<2x64xbf16>, vector<64x128xbf16>, vector<2x128xf32> -> vector<2x128xf32>
    %cst_15 = arith.constant dense<0.000000e+00> : vector<2x128xf32>
    %35 = tpu.matmul %33, %7, %cst_15 {dimension_numbers = #tpu.dot_dimension_numbers<[1], [0], [0], [1], [0, 0, 1, 1], [], []>} : vector<2x64xbf16>, vector<64x128xbf16>, vector<2x128xf32> -> vector<2x128xf32>
    %36 = arith.mulf %34, %34 : vector<2x128xf32>
    %37 = arith.mulf %35, %35 : vector<2x128xf32>
    %38 = arith.addf %36, %37 : vector<2x128xf32>
    %39 = math.sqrt %38 : vector<2x128xf32>
    %cst_16 = arith.constant 0.111111112 : f32
    %40 = vector.broadcast %cst_16 : f32 to vector<2x128xf32>
    %41 = arith.mulf %39, %40 : vector<2x128xf32>
    %c0_17 = arith.constant 0 : index
    %c0_18 = arith.constant 0 : index
    %c0_19 = arith.constant 0 : index
    %42 = vector.load %arg6[%c0_17, %c0_18, %c0_19] : memref<2x2x128xf32, #tpu.memory_space<vmem>>, vector<2x1x128xf32>
    %43 = vector.shape_cast %42 : vector<2x1x128xf32> to vector<2x128xf32>
    %44 = vector.shape_cast %41 : vector<2x128xf32> to vector<2x1x128xf32>
    tpu.vector_store %arg6[%c0_17, %c0_18, %c0_19], %44 {strides = array<i32>} : memref<2x2x128xf32, #tpu.memory_space<vmem>>, vector<2x1x128xf32>,
    %45 = vector.extract_strided_slice %5 {offsets = [1, 0], sizes = [1, 128], strides = [1, 1]} : vector<2x128xf32> to vector<1x128xf32>
    %46 = vector.broadcast %45 : vector<1x128xf32> to vector<16x128xf32>
    %47 = arith.mulf %3, %46 : vector<16x128xf32>
    %48 = vector.extract_strided_slice %6 {offsets = [1, 0], sizes = [1, 128], strides = [1, 1]} : vector<2x128xf32> to vector<1x128xf32>
    %49 = vector.broadcast %48 : vector<1x128xf32> to vector<16x128xf32>
    %50 = arith.mulf %4, %49 : vector<16x128xf32>
    %51 = arith.mulf %47, %47 : vector<16x128xf32>
    %52 = arith.mulf %50, %50 : vector<16x128xf32>
    %53 = arith.addf %51, %52 : vector<16x128xf32>
    %cst_20 = arith.constant 9.99999996E-13 : f32
    %54 = vector.broadcast %cst_20 : f32 to vector<16x128xf32>
    %55 = arith.addf %53, %54 : vector<16x128xf32>
    %56 = math.rsqrt %55 : vector<16x128xf32>
    %57 = arith.mulf %47, %56 : vector<16x128xf32>
    %58 = arith.mulf %50, %56 : vector<16x128xf32>
    %59 = vector.shape_cast %57 : vector<16x128xf32> to vector<2x8x128xf32>
    %60 = vector.shape_cast %58 : vector<16x128xf32> to vector<2x8x128xf32>
    %cst_21 = arith.constant dense<0.000000e+00> : vector<2x8x8xf32>
    %61 = tpu.matmul %59, %59, %cst_21 {dimension_numbers = #tpu.dot_dimension_numbers<[2], [2], [1], [1], [0, 0, 0, 1, 1, 1], [0], [0]>} : vector<2x8x128xf32>, vector<2x8x128xf32>, vector<2x8x8xf32> -> vector<2x8x8xf32>
    %cst_22 = arith.constant dense<0.000000e+00> : vector<2x8x8xf32>
    %62 = tpu.matmul %60, %60, %cst_22 {dimension_numbers = #tpu.dot_dimension_numbers<[2], [2], [1], [1], [0, 0, 0, 1, 1, 1], [0], [0]>} : vector<2x8x128xf32>, vector<2x8x128xf32>, vector<2x8x8xf32> -> vector<2x8x8xf32>
    %63 = arith.addf %61, %62 : vector<2x8x8xf32>
    %cst_23 = arith.constant dense<0.000000e+00> : vector<2x8x8xf32>
    %64 = tpu.matmul %60, %59, %cst_23 {dimension_numbers = #tpu.dot_dimension_numbers<[2], [2], [1], [1], [0, 0, 0, 1, 1, 1], [0], [0]>} : vector<2x8x128xf32>, vector<2x8x128xf32>, vector<2x8x8xf32> -> vector<2x8x8xf32>
    %cst_24 = arith.constant dense<0.000000e+00> : vector<2x8x8xf32>
    %65 = tpu.matmul %59, %60, %cst_24 {dimension_numbers = #tpu.dot_dimension_numbers<[2], [2], [1], [1], [0, 0, 0, 1, 1, 1], [0], [0]>} : vector<2x8x128xf32>, vector<2x8x128xf32>, vector<2x8x8xf32> -> vector<2x8x8xf32>
    %66 = arith.subf %64, %65 : vector<2x8x8xf32>
    %67 = vector.shape_cast %63 : vector<2x8x8xf32> to vector<2x64xf32>
    %68 = arith.truncf %67 : vector<2x64xf32> to vector<2x64xbf16>
    %69 = vector.shape_cast %66 : vector<2x8x8xf32> to vector<2x64xf32>
    %70 = arith.truncf %69 : vector<2x64xf32> to vector<2x64xbf16>
    %cst_25 = arith.constant dense<0.000000e+00> : vector<2x128xf32>
    %71 = tpu.matmul %68, %7, %cst_25 {dimension_numbers = #tpu.dot_dimension_numbers<[1], [0], [0], [1], [0, 0, 1, 1], [], []>} : vector<2x64xbf16>, vector<64x128xbf16>, vector<2x128xf32> -> vector<2x128xf32>
    %cst_26 = arith.constant dense<0.000000e+00> : vector<2x128xf32>
    %72 = tpu.matmul %70, %7, %cst_26 {dimension_numbers = #tpu.dot_dimension_numbers<[1], [0], [0], [1], [0, 0, 1, 1], [], []>} : vector<2x64xbf16>, vector<64x128xbf16>, vector<2x128xf32> -> vector<2x128xf32>
    %73 = arith.mulf %71, %71 : vector<2x128xf32>
    %74 = arith.mulf %72, %72 : vector<2x128xf32>
    %75 = arith.addf %73, %74 : vector<2x128xf32>
    %76 = math.sqrt %75 : vector<2x128xf32>
    %cst_27 = arith.constant 0.111111112 : f32
    %77 = vector.broadcast %cst_27 : f32 to vector<2x128xf32>
    %78 = arith.mulf %76, %77 : vector<2x128xf32>
    %c0_28 = arith.constant 0 : index
    %c1 = arith.constant 1 : index
    %c0_29 = arith.constant 0 : index
    %79 = vector.load %arg6[%c0_28, %c1, %c0_29] : memref<2x2x128xf32, #tpu.memory_space<vmem>>, vector<2x1x128xf32>
    %80 = vector.shape_cast %79 : vector<2x1x128xf32> to vector<2x128xf32>
    %81 = vector.shape_cast %78 : vector<2x128xf32> to vector<2x1x128xf32>
    tpu.vector_store %arg6[%c0_28, %c1, %c0_29], %81 {strides = array<i32>} : memref<2x2x128xf32, #tpu.memory_space<vmem>>, vector<2x1x128xf32>,
    return
  }
  func.func @transform_0(%arg0: i32) -> (i32, i32) {
    %c0_i32 = arith.constant 0 : i32
    %c0_i32_0 = arith.constant 0 : i32
    return %arg0, %c0_i32 : i32, i32
  }
  func.func @transform_1(%arg0: i32) -> (i32, i32) {
    %c0_i32 = arith.constant 0 : i32
    %c0_i32_0 = arith.constant 0 : i32
    %c0_i32_1 = arith.constant 0 : i32
    return %c0_i32, %c0_i32_0 : i32, i32
  }
  func.func @transform_2(%arg0: i32) -> (i32, i32) {
    %c0_i32 = arith.constant 0 : i32
    %c0_i32_0 = arith.constant 0 : i32
    %c0_i32_1 = arith.constant 0 : i32
    return %c0_i32, %c0_i32_0 : i32, i32
  }
  func.func @transform_3(%arg0: i32) -> (i32, i32) {
    %c0_i32 = arith.constant 0 : i32
    %c0_i32_0 = arith.constant 0 : i32
    %c0_i32_1 = arith.constant 0 : i32
    return %c0_i32, %c0_i32_0 : i32, i32
  }
  func.func @transform_4(%arg0: i32) -> (i32, i32) {
    %c0_i32 = arith.constant 0 : i32
    %c0_i32_0 = arith.constant 0 : i32
    %c0_i32_1 = arith.constant 0 : i32
    return %c0_i32, %c0_i32_0 : i32, i32
  }
  func.func @transform_5(%arg0: i32) -> (i32, i32, i32) {
    %c0_i32 = arith.constant 0 : i32
    %c0_i32_0 = arith.constant 0 : i32
    %c0_i32_1 = arith.constant 0 : i32
    return %arg0, %c0_i32, %c0_i32_0 : i32, i32, i32
  }
}

module attributes {stable_mosaic.version = 11 : i64} {
  func.func @_plv_kernel(%arg0: i32, %arg1: memref<16x16xbf16, #tpu.memory_space<vmem>>, %arg2: memref<16x256xbf16, #tpu.memory_space<vmem>>, %arg3: memref<2x128xf32, #tpu.memory_space<vmem>>, %arg4: memref<2x128xf32, #tpu.memory_space<vmem>>, %arg5: memref<64x128xbf16, #tpu.memory_space<vmem>>, %arg6: memref<2x2x128xf32, #tpu.memory_space<vmem>>) attributes {dimension_semantics = [#tpu.dimension_semantics<parallel>], iteration_bounds = array<i64: 1>, scalar_prefetch = 0 : i64, scratch_operands = 0 : i64, tpu.core_type = #tpu.core_type<tc>, window_params = [{transform_indices = @transform_0, window_bounds = array<i64: 16, 16>}, {pipeline_mode = #tpu.pipeline_mode<synchronous>, transform_indices = @transform_1, window_bounds = array<i64: 16, 256>}, {pipeline_mode = #tpu.pipeline_mode<synchronous>, transform_indices = @transform_2, window_bounds = array<i64: 2, 128>}, {pipeline_mode = #tpu.pipeline_mode<synchronous>, transform_indices = @transform_3, window_bounds = array<i64: 2, 128>}, {pipeline_mode = #tpu.pipeline_mode<synchronous>, transform_indices = @transform_4, window_bounds = array<i64: 64, 128>}, {transform_indices = @transform_5, window_bounds = array<i64: 2, 2, 128>}]} {
    %c0 = arith.constant 0 : index
    %c0_0 = arith.constant 0 : index
    %0 = vector.load %arg1[%c0, %c0_0] : memref<16x16xbf16, #tpu.memory_space<vmem>>, vector<16x16xbf16>
    %c0_1 = arith.constant 0 : index
    %c0_2 = arith.constant 0 : index
    %1 = vector.load %arg2[%c0_1, %c0_2] : memref<16x256xbf16, #tpu.memory_space<vmem>>, vector<16x256xbf16>
    %cst = arith.constant dense<0.000000e+00> : vector<16x256xf32>
    %2 = tpu.matmul %0, %1, %cst {dimension_numbers = #tpu.dot_dimension_numbers<[1], [0], [0], [1], [0, 0, 1, 1], [], []>} : vector<16x16xbf16>, vector<16x256xbf16>, vector<16x256xf32> -> vector<16x256xf32>
    %3 = vector.extract_strided_slice %2 {offsets = [0, 0], sizes = [16, 128], strides = [1, 1]} : vector<16x256xf32> to vector<16x128xf32>
    %4 = vector.extract_strided_slice %2 {offsets = [0, 128], sizes = [16, 128], strides = [1, 1]} : vector<16x256xf32> to vector<16x128xf32>
    %c0_3 = arith.constant 0 : index
    %c0_4 = arith.constant 0 : index
    %5 = vector.load %arg3[%c0_3, %c0_4] : memref<2x128xf32, #tpu.memory_space<vmem>>, vector<2x128xf32>
    %c0_5 = arith.constant 0 : index
    %c0_6 = arith.constant 0 : index
    %6 = vector.load %arg4[%c0_5, %c0_6] : memref<2x128xf32, #tpu.memory_space<vmem>>, vector<2x128xf32>
    %c0_7 = arith.constant 0 : index
    %c0_8 = arith.constant 0 : index
    %7 = vector.load %arg5[%c0_7, %c0_8] : memref<64x128xbf16, #tpu.memory_space<vmem>>, vector<64x128xbf16>
    %8 = vector.extract_strided_slice %5 {offsets = [0, 0], sizes = [1, 128], strides = [1, 1]} : vector<2x128xf32> to vector<1x128xf32>
    %9 = vector.broadcast %8 : vector<1x128xf32> to vector<16x128xf32>
    %10 = arith.mulf %3, %9 : vector<16x128xf32>
    %11 = vector.extract_strided_slice %6 {offsets = [0, 0], sizes = [1, 128], strides = [1, 1]} : vector<2x128xf32> to vector<1x128xf32>
    %12 = vector.broadcast %11 : vector<1x128xf32> to vector<16x128xf32>
    %13 = arith.mulf %4, %12 : vector<16x128xf32>
    %14 = arith.mulf %10, %10 : vector<16x128xf32>
    %15 = arith.mulf %13, %13 : vector<16x128xf32>
    %16 = arith.addf %14, %15 : vector<16x128xf32>
    %cst_9 = arith.constant 9.99999996E-13 : f32
    %17 = vector.broadcast %cst_9 : f32 to vector<16x128xf32>
    %18 = arith.addf %16, %17 : vector<16x128xf32>
    %19 = math.rsqrt %18 : vector<16x128xf32>
    %20 = arith.mulf %10, %19 : vector<16x128xf32>
    %21 = arith.mulf %13, %19 : vector<16x128xf32>
    %22 = vector.shape_cast %20 : vector<16x128xf32> to vector<2x8x128xf32>
    %23 = vector.shape_cast %21 : vector<16x128xf32> to vector<2x8x128xf32>
    %cst_10 = arith.constant dense<0.000000e+00> : vector<2x8x8xf32>
    %24 = tpu.matmul %22, %22, %cst_10 {dimension_numbers = #tpu.dot_dimension_numbers<[2], [2], [1], [1], [0, 0, 0, 1, 1, 1], [0], [0]>} : vector<2x8x128xf32>, vector<2x8x128xf32>, vector<2x8x8xf32> -> vector<2x8x8xf32>
    %cst_11 = arith.constant dense<0.000000e+00> : vector<2x8x8xf32>
    %25 = tpu.matmul %23, %23, %cst_11 {dimension_numbers = #tpu.dot_dimension_numbers<[2], [2], [1], [1], [0, 0, 0, 1, 1, 1], [0], [0]>} : vector<2x8x128xf32>, vector<2x8x128xf32>, vector<2x8x8xf32> -> vector<2x8x8xf32>
    %26 = arith.addf %24, %25 : vector<2x8x8xf32>
    %cst_12 = arith.constant dense<0.000000e+00> : vector<2x8x8xf32>
    %27 = tpu.matmul %23, %22, %cst_12 {dimension_numbers = #tpu.dot_dimension_numbers<[2], [2], [1], [1], [0, 0, 0, 1, 1, 1], [0], [0]>} : vector<2x8x128xf32>, vector<2x8x128xf32>, vector<2x8x8xf32> -> vector<2x8x8xf32>
    %cst_13 = arith.constant dense<0.000000e+00> : vector<2x8x8xf32>
    %28 = tpu.matmul %22, %23, %cst_13 {dimension_numbers = #tpu.dot_dimension_numbers<[2], [2], [1], [1], [0, 0, 0, 1, 1, 1], [0], [0]>} : vector<2x8x128xf32>, vector<2x8x128xf32>, vector<2x8x8xf32> -> vector<2x8x8xf32>
    %29 = arith.subf %27, %28 : vector<2x8x8xf32>
    %30 = vector.shape_cast %26 : vector<2x8x8xf32> to vector<2x64xf32>
    %31 = arith.truncf %30 : vector<2x64xf32> to vector<2x64xbf16>
    %32 = vector.shape_cast %29 : vector<2x8x8xf32> to vector<2x64xf32>
    %33 = arith.truncf %32 : vector<2x64xf32> to vector<2x64xbf16>
    %cst_14 = arith.constant dense<0.000000e+00> : vector<2x128xf32>
    %34 = tpu.matmul %31, %7, %cst_14 {dimension_numbers = #tpu.dot_dimension_numbers<[1], [0], [0], [1], [0, 0, 1, 1], [], []>} : vector<2x64xbf16>, vector<64x128xbf16>, vector<2x128xf32> -> vector<2x128xf32>
    %cst_15 = arith.constant dense<0.000000e+00> : vector<2x128xf32>
    %35 = tpu.matmul %33, %7, %cst_15 {dimension_numbers = #tpu.dot_dimension_numbers<[1], [0], [0], [1], [0, 0, 1, 1], [], []>} : vector<2x64xbf16>, vector<64x128xbf16>, vector<2x128xf32> -> vector<2x128xf32>
    %36 = arith.mulf %34, %34 : vector<2x128xf32>
    %37 = arith.mulf %35, %35 : vector<2x128xf32>
    %38 = arith.addf %36, %37 : vector<2x128xf32>
    %39 = math.sqrt %38 : vector<2x128xf32>
    %cst_16 = arith.constant 0.111111112 : f32
    %40 = vector.broadcast %cst_16 : f32 to vector<2x128xf32>
    %41 = arith.mulf %39, %40 : vector<2x128xf32>
    %c0_17 = arith.constant 0 : index
    %c0_18 = arith.constant 0 : index
    %c0_19 = arith.constant 0 : index
    %42 = vector.load %arg6[%c0_17, %c0_18, %c0_19] : memref<2x2x128xf32, #tpu.memory_space<vmem>>, vector<2x1x128xf32>
    %43 = vector.shape_cast %42 : vector<2x1x128xf32> to vector<2x128xf32>
    %44 = vector.shape_cast %41 : vector<2x128xf32> to vector<2x1x128xf32>
    tpu.vector_store %arg6[%c0_17, %c0_18, %c0_19], %44 {strides = array<i32>} : memref<2x2x128xf32, #tpu.memory_space<vmem>>, vector<2x1x128xf32>,
    %45 = vector.extract_strided_slice %5 {offsets = [1, 0], sizes = [1, 128], strides = [1, 1]} : vector<2x128xf32> to vector<1x128xf32>
    %46 = vector.broadcast %45 : vector<1x128xf32> to vector<16x128xf32>
    %47 = arith.mulf %3, %46 : vector<16x128xf32>
    %48 = vector.extract_strided_slice %6 {offsets = [1, 0], sizes = [1, 128], strides = [1, 1]} : vector<2x128xf32> to vector<1x128xf32>
    %49 = vector.broadcast %48 : vector<1x128xf32> to vector<16x128xf32>
    %50 = arith.mulf %4, %49 : vector<16x128xf32>
    %51 = arith.mulf %47, %47 : vector<16x128xf32>
    %52 = arith.mulf %50, %50 : vector<16x128xf32>
    %53 = arith.addf %51, %52 : vector<16x128xf32>
    %cst_20 = arith.constant 9.99999996E-13 : f32
    %54 = vector.broadcast %cst_20 : f32 to vector<16x128xf32>
    %55 = arith.addf %53, %54 : vector<16x128xf32>
    %56 = math.rsqrt %55 : vector<16x128xf32>
    %57 = arith.mulf %47, %56 : vector<16x128xf32>
    %58 = arith.mulf %50, %56 : vector<16x128xf32>
    %59 = vector.shape_cast %57 : vector<16x128xf32> to vector<2x8x128xf32>
    %60 = vector.shape_cast %58 : vector<16x128xf32> to vector<2x8x128xf32>
    %cst_21 = arith.constant dense<0.000000e+00> : vector<2x8x8xf32>
    %61 = tpu.matmul %59, %59, %cst_21 {dimension_numbers = #tpu.dot_dimension_numbers<[2], [2], [1], [1], [0, 0, 0, 1, 1, 1], [0], [0]>} : vector<2x8x128xf32>, vector<2x8x128xf32>, vector<2x8x8xf32> -> vector<2x8x8xf32>
    %cst_22 = arith.constant dense<0.000000e+00> : vector<2x8x8xf32>
    %62 = tpu.matmul %60, %60, %cst_22 {dimension_numbers = #tpu.dot_dimension_numbers<[2], [2], [1], [1], [0, 0, 0, 1, 1, 1], [0], [0]>} : vector<2x8x128xf32>, vector<2x8x128xf32>, vector<2x8x8xf32> -> vector<2x8x8xf32>
    %63 = arith.addf %61, %62 : vector<2x8x8xf32>
    %cst_23 = arith.constant dense<0.000000e+00> : vector<2x8x8xf32>
    %64 = tpu.matmul %60, %59, %cst_23 {dimension_numbers = #tpu.dot_dimension_numbers<[2], [2], [1], [1], [0, 0, 0, 1, 1, 1], [0], [0]>} : vector<2x8x128xf32>, vector<2x8x128xf32>, vector<2x8x8xf32> -> vector<2x8x8xf32>
    %cst_24 = arith.constant dense<0.000000e+00> : vector<2x8x8xf32>
    %65 = tpu.matmul %59, %60, %cst_24 {dimension_numbers = #tpu.dot_dimension_numbers<[2], [2], [1], [1], [0, 0, 0, 1, 1, 1], [0], [0]>} : vector<2x8x128xf32>, vector<2x8x128xf32>, vector<2x8x8xf32> -> vector<2x8x8xf32>
    %66 = arith.subf %64, %65 : vector<2x8x8xf32>
    %67 = vector.shape_cast %63 : vector<2x8x8xf32> to vector<2x64xf32>
    %68 = arith.truncf %67 : vector<2x64xf32> to vector<2x64xbf16>
    %69 = vector.shape_cast %66 : vector<2x8x8xf32> to vector<2x64xf32>
    %70 = arith.truncf %69 : vector<2x64xf32> to vector<2x64xbf16>
    %cst_25 = arith.constant dense<0.000000e+00> : vector<2x128xf32>
    %71 = tpu.matmul %68, %7, %cst_25 {dimension_numbers = #tpu.dot_dimension_numbers<[1], [0], [0], [1], [0, 0, 1, 1], [], []>} : vector<2x64xbf16>, vector<64x128xbf16>, vector<2x128xf32> -> vector<2x128xf32>
    %cst_26 = arith.constant dense<0.000000e+00> : vector<2x128xf32>
    %72 = tpu.matmul %70, %7, %cst_26 {dimension_numbers = #tpu.dot_dimension_numbers<[1], [0], [0], [1], [0, 0, 1, 1], [], []>} : vector<2x64xbf16>, vector<64x128xbf16>, vector<2x128xf32> -> vector<2x128xf32>
    %73 = arith.mulf %71, %71 : vector<2x128xf32>
    %74 = arith.mulf %72, %72 : vector<2x128xf32>
    %75 = arith.addf %73, %74 : vector<2x128xf32>
    %76 = math.sqrt %75 : vector<2x128xf32>
    %cst_27 = arith.constant 0.111111112 : f32
    %77 = vector.broadcast %cst_27 : f32 to vector<2x128xf32>
    %78 = arith.mulf %76, %77 : vector<2x128xf32>
    %c0_28 = arith.constant 0 : index
    %c1 = arith.constant 1 : index
    %c0_29 = arith.constant 0 : index
    %79 = vector.load %arg6[%c0_28, %c1, %c0_29] : memref<2x2x128xf32, #tpu.memory_space<vmem>>, vector<2x1x128xf32>
    %80 = vector.shape_cast %79 : vector<2x1x128xf32> to vector<2x128xf32>
    %81 = vector.shape_cast %78 : vector<2x128xf32> to vector<2x1x128xf32>
    tpu.vector_store %arg6[%c0_28, %c1, %c0_29], %81 {strides = array<i32>} : memref<2x2x128xf32, #tpu.memory_space<vmem>>, vector<2x1x128xf32>,
    return
  }
  func.func @transform_0(%arg0: i32) -> (i32, i32) {
    %c0_i32 = arith.constant 0 : i32
    %c0_i32_0 = arith.constant 0 : i32
    return %arg0, %c0_i32 : i32, i32
  }
  func.func @transform_1(%arg0: i32) -> (i32, i32) {
    %c0_i32 = arith.constant 0 : i32
    %c0_i32_0 = arith.constant 0 : i32
    %c0_i32_1 = arith.constant 0 : i32
    return %c0_i32, %c0_i32_0 : i32, i32
  }
  func.func @transform_2(%arg0: i32) -> (i32, i32) {
    %c0_i32 = arith.constant 0 : i32
    %c0_i32_0 = arith.constant 0 : i32
    %c0_i32_1 = arith.constant 0 : i32
    return %c0_i32, %c0_i32_0 : i32, i32
  }
  func.func @transform_3(%arg0: i32) -> (i32, i32) {
    %c0_i32 = arith.constant 0 : i32
    %c0_i32_0 = arith.constant 0 : i32
    %c0_i32_1 = arith.constant 0 : i32
    return %c0_i32, %c0_i32_0 : i32, i32
  }
  func.func @transform_4(%arg0: i32) -> (i32, i32) {
    %c0_i32 = arith.constant 0 : i32
    %c0_i32_0 = arith.constant 0 : i32
    %c0_i32_1 = arith.constant 0 : i32
    return %c0_i32, %c0_i32_0 : i32, i32
  }
  func.func @transform_5(%arg0: i32) -> (i32, i32, i32) {
    %c0_i32 = arith.constant 0 : i32
    %c0_i32_0 = arith.constant 0 : i32
    %c0_i32_1 = arith.constant 0 : i32
    return %arg0, %c0_i32, %c0_i32_0 : i32, i32, i32
  }
}

</mosaic_0001>

<bundles_post_ra>
// kernel: tpu_custom_call.1
= control target key start
LH: loop header
LB: loop body
LE: loop exit
PB: predicated region body
PF: predicated region fallthrough
CT: control target
= control target key end

     0   :  { %10 = vsyncpa [#allocation3], 0  ;;  %s2775_s0 = inlined_call_operand.hbm [shape: bf16[16,16], index: 0, kind: input, shape index: {}]   ;;  %s2776_s1 = inlined_call_operand.hbm [shape: bf16[16,256], index: 1, kind: input, shape index: {}]   ;;  %s2777_s2 = inlined_call_operand.vmem [shape: f32[2,128], index: 2, kind: input, shape index: {}]   ;;  %s2778_s3 = inlined_call_operand.vmem [shape: f32[2,128], index: 3, kind: input, shape index: {}]   ;;  %s2779_s4 = inlined_call_operand.hbm [shape: bf16[64,128], index: 4, kind: input, shape index: {}]   ;;  %s2780_s5 = inlined_call_operand.hbm [shape: f32[2,2,128], index: 5, kind: output, shape index: {}]  }
   0x1   :  { %11 = vsyncpa [#allocation6], 0 }
   0x2   :  { %12 = vsyncpa [#allocation4], 0  ;;  %s2429_s18 = smov [#allocation5]   ;;  %s2335_s22 = scalar_lea.hbm %s2776_s1, 256 }
   0x3   :  { %s30_s19 = sshll.u32 %s2429_s18, 4  ;;  %p2336_p0 = scmp.ne.s32.totalorder %s2776_s1, %s2335_s22  ;;  %s31_s19 = int_to_ptr.vmem [resolvable:$true] %s30_s19 }
   0x4   :  { %p2339_p1 = scmp.lt.u32.totalorder %s2335_s22, %s2776_s1 }
   0x6   :  { %p2341_p2 = pnand %p2339_p1, %p2336_p0 }
   0x8   :  { %2344 = shalt.err (!%p2341_p2)
}
   0x9   :  { %s2345_s27 = scalar_lea.vmem %s31_s19, 256  ;;  %p2350_p4 = scmp.lt.s32.totalorder %s31_s19, %s31_s19 }
   0xa   :  { %p2346_p3 = scmp.ne.s32.totalorder %s31_s19, %s2345_s27  ;;  %p2351_p5 = scmp.lt.s32.totalorder %s2345_s27, %s2345_s27 }
   0xc   :  { %p2352_p6 = por %p2351_p5, %p2350_p4 }
   0xe   :  { %p2353_p7 = pnand %p2352_p6, %p2346_p3 }
  0x10   :  { %2356 = shalt.err (!%p2353_p7)
}
  0x11   :  { %s2430_s28 = smov 128   ;;  %s2431_s29 = smov 8  }
  0x12   :  { %36 = dma.hbm_to_vmem [thread:$0]  %s2776_s1, 256, %s31_s19, [#allocation6], %s2430_s28, %s2430_s28, %s2431_s29  }
  0x13   :  { %s2432_s7 = smov [#allocation2]   ;;  %s2357_s11 = scalar_lea.hbm %s2775_s0, 128 }
  0x14   :  { %s18_s8 = sshll.u32 %s2432_s7, 4  ;;  %p2358_p8 = scmp.ne.s32.totalorder %s2775_s0, %s2357_s11  ;;  %s19_s8 = int_to_ptr.vmem [resolvable:$true] %s18_s8 }
  0x15   :  { %p2361_p9 = scmp.lt.u32.totalorder %s2357_s11, %s2775_s0 }
  0x17   :  { %p2363_p10 = pnand %p2361_p9, %p2358_p8 }
  0x19   :  { %2366 = shalt.err (!%p2363_p10)
}
  0x1a   :  { %s2367_s16 = scalar_lea.vmem %s19_s8, 128  ;;  %p2372_p12 = scmp.lt.s32.totalorder %s19_s8, %s19_s8 }
  0x1b   :  { %p2368_p11 = scmp.ne.s32.totalorder %s19_s8, %s2367_s16  ;;  %p2373_p13 = scmp.lt.s32.totalorder %s2367_s16, %s2367_s16 }
  0x1d   :  { %p2374_p0 = por %p2373_p13, %p2372_p12 }
  0x1f   :  { %p2375_p1 = pnand %p2374_p0, %p2368_p11 }
  0x21   :  { %2378 = shalt.err (!%p2375_p1)
}
  0x22   :  { %s2433_s1 = smov 64   ;;  %s2434_s17 = smov 4  }
  0x23   :  { %24 = dma.hbm_to_vmem [thread:$0]  %s2775_s0, 128, %s19_s8, [#allocation3], %s2433_s1, %s2433_s1, %s2434_s17  }
  0x24   :  { %s2435_s20 = smov [#allocation7]   ;;  %s2379_s24 = scalar_lea.hbm %s2779_s4, 512 }
  0x25   :  { %s46_s21 = sshll.u32 %s2435_s20, 4  ;;  %p2380_p2 = scmp.ne.s32.totalorder %s2779_s4, %s2379_s24  ;;  %s47_s21 = int_to_ptr.vmem [resolvable:$true] %s46_s21 }
  0x26   :  { %p2383_p3 = scmp.lt.u32.totalorder %s2379_s24, %s2779_s4 }
  0x28   :  { %p2385_p4 = pnand %p2383_p3, %p2380_p2 }
  0x2a   :  { %2388 = shalt.err (!%p2385_p4)
}
  0x2b   :  { %s2389_s30 = scalar_lea.vmem %s47_s21, 512  ;;  %p2394_p6 = scmp.lt.s32.totalorder %s47_s21, %s47_s21 }
  0x2c   :  { %p2390_p5 = scmp.ne.s32.totalorder %s47_s21, %s2389_s30  ;;  %p2395_p7 = scmp.lt.s32.totalorder %s2389_s30, %s2389_s30 }
  0x2e   :  { %p2396_p8 = por %p2395_p7, %p2394_p6 }
  0x30   :  { %p2397_p9 = pnand %p2396_p8, %p2390_p5 }
  0x32   :  { %2400 = shalt.err (!%p2397_p9)
}
  0x33   :  { %52 = dma.hbm_to_vmem [thread:$0]  %s2779_s4, 512, %s47_s21, [#allocation6], %s2433_s1, %s2433_s1, %s2434_s17  }
  0x34   :  { %2423 = dma.done.wait [#allocation3], 128  }
  0x35   :  { %2424 = vsyncadd [#allocation3], 4294967168 }
  0x36   :  { %2425 = dma.done.wait [#allocation6], 768  }
  0x37   :  { %2426 = vsyncadd [#allocation6], 4294966528  ;;  %v2436_v0 = vmov 0   ;;  %v2315_v1 = vld [vmem:[#allocation5 + $0x4] ss:$8 sps:$4 sm:$0xff]   ;;  %v2318_v3 = vld [vmem:[#allocation2] sm:$0xff]   ;;  %v139_v5 = vlaneseq }
  0x38   :  { %118 = vmatprep.mubr.bf16.mxu0 %v2436_v0  ;;  %v2317_v2 = vld [vmem:[#allocation5] ss:$8 sps:$4 sm:$0xff]   ;;  %86 = vmatprep.subr.bf16.mxu0 %v2315_v1  ;;  %vm82_vm0 = vcmask 130048   ;;  %v2437_v4 = vmov 0.0   ;;  %vm2438_vm1 = vmmov 0   ;;  %v2566_v55 = vld [vmem:[#allocation7] sm:$0xff]  }
  0x39   :  { %87 = vmatpush1.bf16.msra.mxu0 %v2317_v2  ;;  %2088 = vmatprep.subr.mxu1 %v2437_v4  ;;  %v2524_v6 = vshrl.u32 %v139_v5, 7  ;;  %v129_v9 = vld [vmem:[%s2777_s2] sm:$0x3]  ;;  %v2439_v57 = vmov 1983009808   ;;  %s2441_s2 = smov 16  }
  0x3a   :  { %2108 = vmatprep.subr.mxu0 %v2437_v4  ;;  %2090 = vmatprep.mubr.msk.f32.mxu1 %vm2438_vm1, %v2437_v4  ;;  %v130_v10 = vld [vmem:[%s2778_s3] sm:$0x3]  ;;  %v729_v58 = vunpack.c.l.s4 %v2439_v57  ;;  %v2440_v63 = vmov 1934713408   ;;  %s2442_s3 = smov 24   ;;  %s2443_s10 = smov 32  }
  0x3b   :  { %v141_v7 = vsub.s32 0, %v2524_v6  ;;  %v1088_v8 = vsub.s32 1, %v2524_v6  ;;  %v760_v0 = vunpack.c.l.s4 %v2440_v63  ;;  %s2444_s11 = smov 40   ;;  %s2445_s12 = smov 48   ;;  %vm821_vm2 = vcmask 64512  }
  0x3c   :  { %2023 = vmatmul.mubr.msk.bf16.vlgmr.msra.gmra.mrb[0].mxu0 %vm82_vm0, %v2318_v3  ;;  %v730_v61 = vunpack.c.0.s8 %v729_v58  ;;  %s2446_s13 = smov 56   ;;  %vm824_vm3 = vcmask 195584   ;;  %vm826_vm4 = vcmask 261120   ;;  %vm828_vm5 = vcmask 326656  }
  0x3d   :  { %2110 = vmatprep.mubr.msk.f32.mxu0 %vm2438_vm1, %v2437_v4  ;;  %v142_v11 = vrot.slane %v129_v9, %v141_v7  ;;  %v1089_v12 = vrot.slane %v129_v9, %v1088_v8  ;;  %v148_v13 = vrot.slane %v130_v10, %v141_v7  ;;  %v1095_v14 = vrot.slane %v130_v10, %v1088_v8 }
  0x3e   :  { %v2573_v3 = vsub.s32 %v730_v61, %v2524_v6  ;;  %v761_v10 = vunpack.c.0.s8 %v760_v0  ;;  %vm830_vm6 = vcmask 392192   ;;  %vm832_vm7 = vcmask 457728  }
  0x3f   :  { %vm961_vm8 = vcmask 523264  }
 0x10f   :  { %v120_v15 = vpop.f32.mrb[0].mxu0 }
 0x110   :  { %v143_v16 = vmul.f32 %v142_v11, %v120_v15  ;;  %v1090_v17 = vmul.f32 %v1089_v12, %v120_v15  ;;  %v122_v18 = vpop.f32.mrb[1].mxu0 }
 0x111   :  { %v149_v19 = vmul.f32 %v148_v13, %v122_v18  ;;  %v1096_v20 = vmul.f32 %v1095_v14, %v122_v18  ;;  %v124_v21 = vpop.f32.mrb[2].mxu0 }
 0x112   :  { %v151_v22 = vmul.f32 %v143_v16, %v143_v16  ;;  %v1098_v23 = vmul.f32 %v1090_v17, %v1090_v17  ;;  %v144_v24 = vmul.f32 %v142_v11, %v124_v21  ;;  %v1091_v25 = vmul.f32 %v1089_v12, %v124_v21  ;;  %v126_v26 = vpop.f32.mrb[3].mxu0 }
 0x113   :  { %v153_v27 = vmul.f32 %v149_v19, %v149_v19  ;;  %v1100_v28 = vmul.f32 %v1096_v20, %v1096_v20  ;;  %v150_v29 = vmul.f32 %v148_v13, %v126_v26  ;;  %v1097_v30 = vmul.f32 %v1095_v14, %v126_v26 }
 0x114   :  { %v152_v31 = vmul.f32 %v144_v24, %v144_v24  ;;  %v1099_v32 = vmul.f32 %v1091_v25, %v1091_v25  ;;  %v2586_v21 = vsub.s32 %v761_v10, %v2524_v6 }
 0x115   :  { %v155_v33 = vadd.f32 %v153_v27, %v151_v22  ;;  %v1102_v34 = vadd.f32 %v1100_v28, %v1098_v23  ;;  %v154_v35 = vmul.f32 %v150_v29, %v150_v29  ;;  %v1101_v36 = vmul.f32 %v1097_v30, %v1097_v30  ;;  %v2591_v28 = vld [vmem:[#allocation7 + $0x10] sm:$0xff]  }
 0x117   :  { %v157_v37 = vadd.f32 1e-12, %v155_v33  ;;  %v1104_v38 = vadd.f32 1e-12, %v1102_v34  ;;  %v156_v39 = vadd.f32 %v154_v35, %v152_v31  ;;  %v1103_v40 = vadd.f32 %v1101_v36, %v1099_v32 }
 0x119   :  { %2323 = vrsqrt.f32 %v157_v37  ;;  %v158_v41 = vadd.f32 1e-12, %v156_v39  ;;  %v1105_v42 = vadd.f32 1e-12, %v1103_v40  ;;  %v2603_v37 = vld [vmem:[#allocation7 + $0x18] sm:$0xff]  }
 0x11a   :  { %2325 = vrsqrt.f32 %v1104_v38 }
 0x11b   :  { %2327 = vrsqrt.f32 %v158_v41 }
 0x11c   :  { %2329 = vrsqrt.f32 %v1105_v42 }
 0x123   :  { %v2324_v43 = vpop.eup %2323 }
 0x124   :  { %v2326_v44 = vpop.eup %2325  ;;  %v163_v45 = vmul.f32 %v2324_v43, %v149_v19  ;;  %v161_v46 = vmul.f32 %v2324_v43, %v143_v16  ;;  %v2579_v16 = vld [vmem:[#allocation7 + $0x8] sm:$0xff]  }
 0x125   :  { %v2328_v47 = vpop.eup %2327  ;;  %v2534_v48 = vmul.f32 %v2326_v44, %v1096_v20  ;;  %v2536_v49 = vmul.f32 %v2326_v44, %v1090_v17 }
 0x126   :  { %v2330_v50 = vpop.eup %2329  ;;  %v164_v51 = vmul.f32 %v2328_v47, %v150_v29  ;;  %2089 = vmatpush3.xpose.msra.mxu1 %v163_v45  ;;  %2109 = vmatpush3.xpose.msra.mxu0 %v161_v46  ;;  %v162_v52 = vmul.f32 %v2328_v47, %v144_v24 }
 0x127   :  { %v2538_v53 = vmul.f32 %v2330_v50, %v1097_v30  ;;  %2093 = vmatprep.subr.mxu1 %v2437_v4  ;;  %2113 = vmatprep.subr.mxu0 %v2437_v4  ;;  %v2542_v54 = vmul.f32 %v2330_v50, %v1091_v25 }
 0x129   :  { %2091 = vmatmul.mubr.f32.vlgmr.msra.gmra.mrb[0].mxu1 %v163_v45  ;;  %2111 = vmatmul.mubr.f32.vlgmr.msra.gmra.mrb[4].mxu0 %v163_v45 }
 0x12a   :  { %2094 = vmatpush3.xpose.msra.mxu1 %v164_v51  ;;  %2114 = vmatpush3.xpose.msra.mxu0 %v162_v52 }
 0x12b   :  { %2095 = vmatprep.mubr.msk.f32.mxu1 %vm2438_vm1, %v2437_v4  ;;  %2115 = vmatprep.mubr.msk.f32.mxu0 %vm2438_vm1, %v2437_v4 }
 0x12c   :  { %2098 = vmatprep.subr.mxu1 %v2437_v4  ;;  %2118 = vmatprep.subr.mxu0 %v2437_v4 }
 0x12d   :  { %2096 = vmatmul.mubr.f32.vlgmr.msra.gmra.mrb[2].mxu1 %v164_v51  ;;  %2116 = vmatmul.mubr.f32.vlgmr.msra.gmra.mrb[6].mxu0 %v164_v51 }
 0x12e   :  { %2099 = vmatpush3.xpose.msra.mxu1 %v161_v46  ;;  %2119 = vmatpush3.xpose.msra.mxu0 %v163_v45 }
 0x12f   :  { %2100 = vmatprep.mubr.msk.f32.mxu1 %vm2438_vm1, %v2437_v4  ;;  %2120 = vmatprep.mubr.msk.f32.mxu0 %vm2438_vm1, %v2437_v4 }
 0x130   :  { %2103 = vmatprep.subr.mxu1 %v2437_v4  ;;  %2128 = vmatprep.subr.bf16.mxu0 %v2437_v4 }
 0x131   :  { %2101 = vmatmul.mubr.f32.vlgmr.msra.gmra.mrb[0].mxu1 %v161_v46  ;;  %2121 = vmatmul.mubr.f32.vlgmr.msra.gmra.mrb[8].mxu0 %v161_v46 }
 0x132   :  { %2104 = vmatpush3.xpose.msra.mxu1 %v162_v52  ;;  %2105 = vmatprep.mubr.msk.f32.mxu1 %vm2438_vm1, %v2437_v4 }
 0x133   :  { %2123 = vmatprep.subr.mxu1 %v2437_v4  ;;  %2136 = vmatprep.mubr.msk.bf16.mxu0 %vm2438_vm1, %v2437_v4 }
 0x134   :  { %2129 = vmatpush3.bf16.msra.mxu0 %v2566_v55 }
 0x135   :  { %2106 = vmatmul.mubr.f32.vlgmr.msra.gmra.mrb[2].mxu1 %v162_v52  ;;  %2130 = vmatprep.subr.bf16.mxu0 %v2437_v4 }
 0x136   :  { %2124 = vmatpush3.xpose.msra.mxu1 %v164_v51  ;;  %2125 = vmatprep.mubr.msk.f32.mxu1 %vm2438_vm1, %v2437_v4 }
 0x137   :  { %2140 = vmatprep.subr.bf16.mxu1 %v2437_v4 }
 0x138   :  { %2131 = vmatpush3.bf16.msra.mxu0 %v2579_v16 }
 0x139   :  { %2126 = vmatmul.mubr.f32.vlgmr.msra.gmra.mrb[4].mxu1 %v162_v52  ;;  %2132 = vmatprep.subr.bf16.mxu0 %v2437_v4 }
 0x13a   :  { %2148 = vmatprep.mubr.msk.bf16.mxu1 %vm2438_vm1, %v2437_v4  ;;  %2141 = vmatpush3.bf16.msra.mxu1 %v2566_v55 }
 0x13b   :  { %2142 = vmatprep.subr.bf16.mxu1 %v2437_v4 }
 0x13c   :  { %2133 = vmatpush3.bf16.msra.mxu0 %v2591_v28 }
 0x13d   :  { %2134 = vmatprep.subr.bf16.mxu0 %v2437_v4 }
 0x13e   :  { %2143 = vmatpush3.bf16.msra.mxu1 %v2579_v16 }
 0x13f   :  { %2144 = vmatprep.subr.bf16.mxu1 %v2437_v4 }
 0x140   :  { %2135 = vmatpush3.bf16.msra.mxu0 %v2603_v37 }
 0x141   :  { %2152 = vmatprep.subr.mxu0 %v2437_v4 }
 0x142   :  { %2145 = vmatpush3.bf16.msra.mxu1 %v2591_v28 }
 0x143   :  { %2146 = vmatprep.subr.bf16.mxu1 %v2437_v4 }
 0x146   :  { %2147 = vmatpush3.bf16.msra.mxu1 %v2603_v37 }
 0x147   :  { %2157 = vmatprep.subr.mxu1 %v2437_v4 }
 0x1fc   :  { %v511_v56 = vpop.f32.mrb[4].mxu0 }
 0x1fd   :  { %v2112_v59 = vpop.f32.mrb[5].mxu0 }
 0x200   :  { %v581_v60 = vpop.f32.mrb[6].mxu0 }
 0x201   :  { %v2117_v62 = vpop.f32.mrb[7].mxu0 }
 0x204   :  { %v371_v1 = vpop.f32.mrb[0].mxu1  ;;  %v651_v2 = vpop.f32.mrb[8].mxu0 }
 0x205   :  { %v725_v5 = vsub.f32 %v511_v56, %v651_v2  ;;  %v2102_v7 = vpop.f32.mrb[1].mxu1  ;;  %v2122_v8 = vpop.f32.mrb[9].mxu0  ;;  %v727_v9 = vcombine.high %v371_v1, %v2437_v4  ;;  %v734_v12 = vrot.slane %v371_v1, %v2573_v3 }
 0x207   :  { %v741_v17 = vrot.slane %v727_v9, %v2573_v3  ;;  %v835_v23 = vcombine.high %v725_v5, %v2437_v4  ;;  %v842_v29 = vrot.slane %v725_v5, %v2573_v3 }
 0x208   :  { %v441_v11 = vpop.f32.mrb[2].mxu1 }
 0x209   :  { %v742_v13 = vcombine.high %v441_v11, %v2437_v4  ;;  %v749_v14 = vrot.slane %v441_v11, %v2573_v3  ;;  %v2107_v15 = vpop.f32.mrb[3].mxu1  ;;  %v849_v33 = vrot.slane %v835_v23, %v2573_v3 }
 0x20b   :  { %v756_v18 = vrot.slane %v742_v13, %v2573_v3  ;;  %v757_v19 = vcombine.low %v734_v12, %v749_v14  ;;  %v758_v20 = vcombine.high %v734_v12, %v749_v14 }
 0x20c   :  { %v721_v22 = vpop.f32.mrb[4].mxu1 }
 0x20d   :  { %v773_v24 = vcombine.low %v741_v17, %v756_v18  ;;  %v774_v25 = vcombine.high %v741_v17, %v756_v18  ;;  %v726_v26 = vsub.f32 %v581_v60, %v721_v22  ;;  %v2127_v27 = vpop.f32.mrb[5].mxu1  ;;  %v772_v32 = vrot.slane %v758_v20, %v2586_v21 }
 0x20e   :  { %v765_v38 = vrot.slane %v757_v19, %v2586_v21 }
 0x20f   :  { %v850_v30 = vcombine.high %v726_v26, %v2437_v4  ;;  %v857_v31 = vrot.slane %v726_v26, %v2573_v3  ;;  %v781_v39 = vrot.slane %v773_v24, %v2586_v21  ;;  %v790_v44 = vcombine.high %v772_v32, %v2437_v4 }
 0x210   :  { %v788_v45 = vrot.slane %v774_v25, %v2586_v21  ;;  %v789_v52 = vcombine.high %v765_v38, %v2437_v4 }
 0x211   :  { %v864_v34 = vrot.slane %v850_v30, %v2573_v3  ;;  %v865_v35 = vcombine.low %v842_v29, %v857_v31  ;;  %v866_v36 = vcombine.high %v842_v29, %v857_v31  ;;  %v791_v59 = vcombine.high %v781_v39, %v2437_v4 }
 0x212   :  { %v792_v62 = vcombine.high %v788_v45, %v2437_v4 }
 0x213   :  { %v881_v40 = vcombine.low %v849_v33, %v864_v34  ;;  %v882_v41 = vcombine.high %v849_v33, %v864_v34  ;;  %v880_v42 = vrot.slane %v866_v36, %v2586_v21  ;;  %v873_v43 = vrot.slane %v865_v35, %v2586_v21 }
 0x215   :  { %v2245_v46 = vpack.i.bf16 %v880_v42, %v772_v32  ;;  %v898_v47 = vcombine.high %v880_v42, %v2437_v4  ;;  %v897_v50 = vcombine.high %v873_v43, %v2437_v4  ;;  %v889_v51 = vrot.slane %v881_v40, %v2586_v21 }
 0x216   :  { %v896_v56 = vrot.slane %v882_v41, %v2586_v21 }
 0x217   :  { %2246 = vrot.lane.b32.xlu0 %v2245_v46, %s2441_s2  ;;  %v2255_v57 = vpack.i.bf16 %v898_v47, %v790_v44  ;;  %v2260_v58 = vpack.i.bf16 %v889_v51, %v781_v39  ;;  %v899_v60 = vcombine.high %v889_v51, %v2437_v4  ;;  %v2250_v0 = vpack.i.bf16 %v897_v50, %v789_v52 }
 0x218   :  { %v2265_v61 = vpack.i.bf16 %v896_v56, %v788_v45  ;;  %v900_v63 = vcombine.high %v896_v56, %v2437_v4 }
 0x219   :  { %2256 = vrot.lane.b32.xlu1 %v2255_v57, %s2442_s3  ;;  %v2270_v1 = vpack.i.bf16 %v899_v60, %v791_v59 }
 0x21a   :  { %v2275_v2 = vpack.i.bf16 %v900_v63, %v792_v62 }
 0x21b   :  { %2251 = vrot.lane.b32.xlu0 %v2250_v0, %s2431_s29 }
 0x21d   :  { %2261 = vrot.lane.b32.xlu1 %v2260_v58, %s2443_s10 }
 0x21f   :  { %2271 = vrot.lane.b32.xlu0 %v2270_v1, %s2444_s11 }
 0x221   :  { %2266 = vrot.lane.b32.xlu1 %v2265_v61, %s2445_s12 }
 0x223   :  { %2276 = vrot.lane.b32.xlu0 %v2275_v2, %s2446_s13 }
 0x289   :  { %v2247_v5 = vpop.permute.xlu0 %2246 }
 0x28a   :  { %v2249_v11 = vunpack.i.h.bf16 %v2247_v5  ;;  %v2248_v12 = vunpack.i.l.bf16 %v2247_v5 }
 0x28b   :  { %v2257_v7 = vpop.permute.xlu1 %2256 }
 0x28c   :  { %v2259_v13 = vunpack.i.h.bf16 %v2257_v7  ;;  %v2258_v14 = vunpack.i.l.bf16 %v2257_v7 }
 0x28d   :  { %v2252_v8 = vpop.permute.xlu0 %2251 }
 0x28e   :  { %v2254_v9 = vunpack.i.h.bf16 %v2252_v8  ;;  %v2253_v10 = vunpack.i.l.bf16 %v2252_v8 }
 0x28f   :  { %v2262_v15 = vpop.permute.xlu1 %2261 }
 0x290   :  { %v929_v17 = vsel %vm821_vm2, %v873_v43, %v2254_v9  ;;  %v822_v18 = vsel %vm821_vm2, %v765_v38, %v2253_v10  ;;  %v2264_v19 = vunpack.i.h.bf16 %v2262_v15  ;;  %v2263_v20 = vunpack.i.l.bf16 %v2262_v15 }
 0x291   :  { %v930_v22 = vsel %vm82_vm0, %v929_v17, %v2249_v11  ;;  %v823_v23 = vsel %vm82_vm0, %v822_v18, %v2248_v12  ;;  %v2272_v24 = vpop.permute.xlu0 %2271 }
 0x292   :  { %v825_v25 = vsel %vm824_vm3, %v823_v23, %v2258_v14  ;;  %v931_v26 = vsel %vm824_vm3, %v930_v22, %v2259_v13  ;;  %v2274_v27 = vunpack.i.h.bf16 %v2272_v24  ;;  %v2273_v29 = vunpack.i.l.bf16 %v2272_v24 }
 0x293   :  { %v932_v30 = vsel %vm826_vm4, %v931_v26, %v2264_v19  ;;  %v827_v31 = vsel %vm826_vm4, %v825_v25, %v2263_v20  ;;  %v2267_v32 = vpop.permute.xlu1 %2266 }
 0x294   :  { %v933_v33 = vsel %vm828_vm5, %v932_v30, %v2274_v27  ;;  %v829_v34 = vsel %vm828_vm5, %v827_v31, %v2273_v29  ;;  %v2269_v35 = vunpack.i.h.bf16 %v2267_v32  ;;  %v2268_v36 = vunpack.i.l.bf16 %v2267_v32 }
 0x295   :  { %v2277_v38 = vpop.permute.xlu0 %2276 }
 0x296   :  { %v831_v39 = vsel %vm830_vm6, %v829_v34, %v2268_v36  ;;  %v934_v40 = vsel %vm830_vm6, %v933_v33, %v2269_v35  ;;  %v2279_v41 = vunpack.i.h.bf16 %v2277_v38  ;;  %v2278_v42 = vunpack.i.l.bf16 %v2277_v38 }
 0x298   :  { %v833_v43 = vsel %vm832_vm7, %v831_v39, %v2278_v42  ;;  %v935_v44 = vsel %vm832_vm7, %v934_v40, %v2279_v41 }
 0x299   :  { %v834_v45 = vpack.c.bf16 %v833_v43, %v833_v43  ;;  %v936_v46 = vpack.c.bf16 %v935_v44, %v935_v44 }
 0x29b   :  { %2137 = vmatmul.mubr.msk.bf16.vlgmr.msra.gmra.mrb[12].mxu0 %vm961_vm8, %v834_v45  ;;  %2149 = vmatmul.mubr.msk.bf16.vlgmr.msra.gmra.mrb[8].mxu1 %vm961_vm8, %v936_v46 }
 0x29c   :  { %2153 = vmatpush3.xpose.msra.mxu0 %v2534_v48  ;;  %2158 = vmatpush3.xpose.msra.mxu1 %v2538_v53 }
 0x29d   :  { %2154 = vmatprep.mubr.msk.f32.mxu0 %vm2438_vm1, %v2437_v4  ;;  %2159 = vmatprep.mubr.msk.f32.mxu1 %vm2438_vm1, %v2437_v4 }
 0x29e   :  { %2162 = vmatprep.subr.mxu0 %v2437_v4  ;;  %2167 = vmatprep.subr.mxu1 %v2437_v4 }
 0x2a3   :  { %2155 = vmatmul.mubr.f32.vlgmr.msra.gmra.mrb[10].mxu0 %v2534_v48  ;;  %2160 = vmatmul.mubr.f32.vlgmr.msra.gmra.mrb[6].mxu1 %v2538_v53 }
 0x2a4   :  { %2163 = vmatpush3.xpose.msra.mxu0 %v2536_v49  ;;  %2168 = vmatpush3.xpose.msra.mxu1 %v2542_v54 }
 0x2a5   :  { %2164 = vmatprep.mubr.msk.f32.mxu0 %vm2438_vm1, %v2437_v4  ;;  %2169 = vmatprep.mubr.msk.f32.mxu1 %vm2438_vm1, %v2437_v4 }
 0x2a6   :  { %2172 = vmatprep.subr.mxu0 %v2437_v4  ;;  %2177 = vmatprep.subr.mxu1 %v2437_v4 }
 0x2ab   :  { %2165 = vmatmul.mubr.f32.vlgmr.msra.gmra.mrb[10].mxu0 %v2536_v49  ;;  %2170 = vmatmul.mubr.f32.vlgmr.msra.gmra.mrb[6].mxu1 %v2542_v54 }
 0x2ac   :  { %2173 = vmatpush3.xpose.msra.mxu0 %v2536_v49  ;;  %2178 = vmatpush3.xpose.msra.mxu1 %v2542_v54 }
 0x2ad   :  { %2174 = vmatprep.mubr.msk.f32.mxu0 %vm2438_vm1, %v2437_v4  ;;  %2179 = vmatprep.mubr.msk.f32.mxu1 %vm2438_vm1, %v2437_v4 }
 0x2ae   :  { %2182 = vmatprep.subr.mxu0 %v2437_v4  ;;  %2187 = vmatprep.subr.mxu1 %v2437_v4 }
 0x2af   :  { %2175 = vmatmul.mubr.f32.vlgmr.msra.gmra.mrb[16].mxu0 %v2534_v48  ;;  %2180 = vmatmul.mubr.f32.vlgmr.msra.gmra.mrb[12].mxu1 %v2538_v53 }
 0x2b0   :  { %2183 = vmatpush3.xpose.msra.mxu0 %v2534_v48  ;;  %2188 = vmatpush3.xpose.msra.mxu1 %v2538_v53 }
 0x2b1   :  { %2184 = vmatprep.mubr.msk.f32.mxu0 %vm2438_vm1, %v2437_v4  ;;  %2189 = vmatprep.mubr.msk.f32.mxu1 %vm2438_vm1, %v2437_v4 }
 0x2b2   :  { %2192 = vmatprep.subr.bf16.mxu0 %v2437_v4  ;;  %2204 = vmatprep.subr.bf16.mxu1 %v2437_v4 }
 0x2b3   :  { %2185 = vmatmul.mubr.f32.vlgmr.msra.gmra.mrb[18].mxu0 %v2536_v49  ;;  %2190 = vmatmul.mubr.f32.vlgmr.msra.gmra.mrb[14].mxu1 %v2542_v54 }
 0x2b4   :  { %2193 = vmatpush3.bf16.msra.mxu0 %v2566_v55  ;;  %2205 = vmatpush3.bf16.msra.mxu1 %v2566_v55 }
 0x2b5   :  { %2194 = vmatprep.subr.bf16.mxu0 %v2437_v4  ;;  %2206 = vmatprep.subr.bf16.mxu1 %v2437_v4 }
 0x2b6   :  { %2200 = vmatprep.mubr.msk.bf16.mxu0 %vm2438_vm1, %v2437_v4  ;;  %2212 = vmatprep.mubr.msk.bf16.mxu1 %vm2438_vm1, %v2437_v4 }
 0x2b8   :  { %2195 = vmatpush3.bf16.msra.mxu0 %v2579_v16  ;;  %2207 = vmatpush3.bf16.msra.mxu1 %v2579_v16 }
 0x2b9   :  { %2196 = vmatprep.subr.bf16.mxu0 %v2437_v4  ;;  %2208 = vmatprep.subr.bf16.mxu1 %v2437_v4 }
 0x2bc   :  { %2197 = vmatpush3.bf16.msra.mxu0 %v2591_v28  ;;  %2209 = vmatpush3.bf16.msra.mxu1 %v2591_v28  ;;  %v2447_v28 = vmov 1966171168  }
 0x2bd   :  { %2198 = vmatprep.subr.bf16.mxu0 %v2437_v4  ;;  %2210 = vmatprep.subr.bf16.mxu1 %v2437_v4  ;;  %v1061_v57 = vunpack.c.l.s4 %v2447_v28 }
 0x2c0   :  { %2199 = vmatpush3.bf16.msra.mxu0 %v2603_v37  ;;  %2211 = vmatpush3.bf16.msra.mxu1 %v2603_v37  ;;  %v1062_v37 = vunpack.c.0.s8 %v1061_v57 }
 0x2c2   :  { %v2712_v17 = vsub.s32 %v1062_v37, %v2524_v6 }
 0x36e   :  { %v999_v48 = vpop.f32.mrb[12].mxu0  ;;  %v1042_v49 = vpop.f32.mrb[8].mxu1 }
 0x36f   :  { %v1048_v53 = vmul.f32 %v999_v48, %v999_v48  ;;  %v1049_v54 = vmul.f32 %v1042_v49, %v1042_v49  ;;  %v2138_v55 = vpop.f32.mrb[13].mxu0  ;;  %v2150_v16 = vpop.f32.mrb[9].mxu1 }
 0x370   :  { %v1002_v47 = vpop.f32.mrb[14].mxu0  ;;  %v1045_v50 = vpop.f32.mrb[10].mxu1 }
 0x371   :  { %v1050_v51 = vadd.f32 %v1049_v54, %v1048_v53  ;;  %v2139_v52 = vpop.f32.mrb[15].mxu0  ;;  %v2151_v56 = vpop.f32.mrb[11].mxu1 }
 0x373   :  { %2331 = vrsqrt.f32 %v1050_v51  ;;  %vm1053_vm9 = vcmp.eq.f32.partialorder %v1050_v51, inf  ;;  %vm1055_vm10 = vcmp.eq.f32.partialorder %v1050_v51, 0.0  ;;  %v1056_v8 = vand.u32 2147483648, %v1050_v51 }
 0x37d   :  { %v2332_v58 = vpop.eup %2331 }
 0x37e   :  { %v1052_v59 = vmul.f32 %v2332_v58, %v1050_v51  ;;  %v1318_v60 = vpop.f32.mrb[10].mxu0  ;;  %v1388_v61 = vpop.f32.mrb[6].mxu1 }
 0x37f   :  { %v1674_v62 = vcombine.high %v1318_v60, %v2437_v4  ;;  %v1681_v63 = vrot.slane %v1318_v60, %v2573_v3  ;;  %v1689_v0 = vcombine.high %v1388_v61, %v2437_v4  ;;  %v1696_v1 = vrot.slane %v1388_v61, %v2573_v3  ;;  %v2166_v2 = vpop.f32.mrb[11].mxu0  ;;  %v2171_v5 = vpop.f32.mrb[7].mxu1 }
 0x380   :  { %v1054_v7 = vsel %vm1053_vm9, %v1050_v51, %v1052_v59 }
 0x381   :  { %v1688_v9 = vrot.slane %v1674_v62, %v2573_v3  ;;  %v1703_v10 = vrot.slane %v1689_v0, %v2573_v3  ;;  %v1704_v11 = vcombine.low %v1681_v63, %v1696_v1  ;;  %v1705_v12 = vcombine.high %v1681_v63, %v1696_v1 }
 0x382   :  { %v1458_v13 = vpop.f32.mrb[16].mxu0  ;;  %v1528_v14 = vpop.f32.mrb[12].mxu1  ;;  %v1057_v15 = vsel %vm1055_vm10, %v1056_v8, %v1054_v7 }
 0x383   :  { %v1720_v18 = vcombine.low %v1688_v9, %v1703_v10  ;;  %v1721_v19 = vcombine.high %v1688_v9, %v1703_v10  ;;  %v2176_v20 = vpop.f32.mrb[17].mxu0  ;;  %v2181_v22 = vpop.f32.mrb[13].mxu1  ;;  %v1058_v23 = vmul.f32 0.11111111, %v1057_v15  ;;  %v1719_v36 = vrot.slane %v1705_v12, %v2586_v21 }
 0x384   :  { %v1712_v38 = vrot.slane %v1704_v11, %v2586_v21 }
 0x385   :  { %v1066_v26 = vrot.slane %v1058_v23, %v2712_v17  ;;  %v1728_v43 = vrot.slane %v1720_v18, %v2586_v21  ;;  %v1737_v53 = vcombine.high %v1719_v36, %v2437_v4  ;;  %v1735_v54 = vrot.slane %v1721_v19, %v2586_v21 }
 0x386   :  { %v1598_v24 = vpop.f32.mrb[18].mxu0  ;;  %v1668_v25 = vpop.f32.mrb[14].mxu1  ;;  %v1736_v49 = vcombine.high %v1712_v38, %v2437_v4 }
 0x387   :  { %v1672_v27 = vsub.f32 %v1458_v13, %v1598_v24  ;;  %v1673_v29 = vsub.f32 %v1528_v14, %v1668_v25  ;;  %v2186_v30 = vpop.f32.mrb[19].mxu0  ;;  %v2191_v31 = vpop.f32.mrb[15].mxu1  ;;  %v1067_v32 = vcombine.high %v1066_v26, %v1066_v26  ;;  %2030 = vst.sshfl [vmem:[#allocation8] sm:$0x1 pattern:$0x73625140] %v1066_v26  ;;  %v1738_v51 = vcombine.high %v1728_v43, %v2437_v4 }
 0x388   :  { %v1739_v59 = vcombine.high %v1735_v54, %v2437_v4 }
 0x389   :  { %v1776_v33 = vcombine.high %v1672_v27, %v2437_v4  ;;  %v1783_v6 = vrot.slane %v1672_v27, %v2573_v3  ;;  %v1791_v34 = vcombine.high %v1673_v29, %v2437_v4  ;;  %v1798_v35 = vrot.slane %v1673_v29, %v2573_v3  ;;  %2031 = vst.sshfl [vmem:[#allocation8 + $0x2] sm:$0x1 pattern:$0x73625140] %v1067_v32 }
 0x38b   :  { %v1790_v39 = vrot.slane %v1776_v33, %v2573_v3  ;;  %v1805_v40 = vrot.slane %v1791_v34, %v2573_v3  ;;  %v1806_v41 = vcombine.low %v1783_v6, %v1798_v35  ;;  %v1807_v42 = vcombine.high %v1783_v6, %v1798_v35 }
 0x38d   :  { %v1822_v44 = vcombine.low %v1790_v39, %v1805_v40  ;;  %v1823_v45 = vcombine.high %v1790_v39, %v1805_v40  ;;  %v1821_v46 = vrot.slane %v1807_v42, %v2586_v21  ;;  %v1814_v48 = vrot.slane %v1806_v41, %v2586_v21 }
 0x38f   :  { %v2280_v55 = vpack.i.bf16 %v1821_v46, %v1719_v36  ;;  %v1838_v16 = vcombine.high %v1814_v48, %v2437_v4  ;;  %v1830_v3 = vrot.slane %v1822_v44, %v2586_v21  ;;  %v1839_v47 = vcombine.high %v1821_v46, %v2437_v4 }
 0x390   :  { %v1837_v50 = vrot.slane %v1823_v45, %v2586_v21 }
 0x391   :  { %2281 = vrot.lane.b32.xlu0 %v2280_v55, %s2441_s2  ;;  %v2285_v52 = vpack.i.bf16 %v1838_v16, %v1736_v49  ;;  %v2295_v56 = vpack.i.bf16 %v1830_v3, %v1728_v43  ;;  %v2290_v28 = vpack.i.bf16 %v1839_v47, %v1737_v53  ;;  %v1840_v57 = vcombine.high %v1830_v3, %v2437_v4 }
 0x392   :  { %v2305_v58 = vpack.i.bf16 %v1837_v50, %v1735_v54  ;;  %v1841_v60 = vcombine.high %v1837_v50, %v2437_v4 }
 0x393   :  { %2286 = vrot.lane.b32.xlu1 %v2285_v52, %s2431_s29  ;;  %v2300_v61 = vpack.i.bf16 %v1840_v57, %v1738_v51  ;;  %s2448_s29 = smov [#allocation8]  }
 0x394   :  { %v2310_v37 = vpack.i.bf16 %v1841_v60, %v1739_v59  ;;  %s2007_s14 = sshll.u32 %s2448_s29, 4  ;;  %s2008_s14 = int_to_ptr.vmem [resolvable:$true] %s2007_s14 }
 0x395   :  { %2296 = vrot.lane.b32.xlu0 %v2295_v56, %s2443_s10  ;;  %s2401_s15 = scalar_lea.vmem %s2008_s14, 64  ;;  %p2406_p11 = scmp.lt.s32.totalorder %s2008_s14, %s2008_s14 }
 0x396   :  { %p2402_p10 = scmp.ne.s32.totalorder %s2008_s14, %s2401_s15  ;;  %p2407_p12 = scmp.lt.s32.totalorder %s2401_s15, %s2401_s15 }
 0x397   :  { %2291 = vrot.lane.b32.xlu1 %v2290_v28, %s2442_s3 }
 0x398   :  { %p2408_p13 = por %p2407_p12, %p2406_p11 }
 0x399   :  { %2306 = vrot.lane.b32.xlu0 %v2305_v58, %s2445_s12 }
 0x39a   :  { %p2409_p0 = pnand %p2408_p13, %p2402_p10 }
 0x39b   :  { %2301 = vrot.lane.b32.xlu1 %v2300_v61, %s2444_s11 }
 0x39f   :  { %2311 = vrot.lane.b32.xlu1 %v2310_v37, %s2446_s13 }
 0x403   :  { %v2282_v21 = vpop.permute.xlu0 %2281 }
 0x404   :  { %v2284_v5 = vunpack.i.h.bf16 %v2282_v21  ;;  %v2283_v7 = vunpack.i.l.bf16 %v2282_v21 }
 0x405   :  { %v2287_v62 = vpop.permute.xlu1 %2286 }
 0x406   :  { %v2289_v63 = vunpack.i.h.bf16 %v2287_v62  ;;  %v2288_v0 = vunpack.i.l.bf16 %v2287_v62 }
 0x407   :  { %v2297_v2 = vpop.permute.xlu0 %2296 }
 0x408   :  { %v1870_v4 = vsel %vm821_vm2, %v1814_v48, %v2289_v63  ;;  %v1768_v1 = vsel %vm821_vm2, %v1712_v38, %v2288_v0  ;;  %v2299_v15 = vunpack.i.h.bf16 %v2297_v2  ;;  %v2298_v18 = vunpack.i.l.bf16 %v2297_v2 }
 0x409   :  { %v2292_v8 = vpop.permute.xlu1 %2291  ;;  %v1769_v11 = vsel %vm82_vm0, %v1768_v1, %v2283_v7  ;;  %v1871_v12 = vsel %vm82_vm0, %v1870_v4, %v2284_v5 }
 0x40a   :  { %v2294_v9 = vunpack.i.h.bf16 %v2292_v8  ;;  %v2293_v10 = vunpack.i.l.bf16 %v2292_v8 }
 0x40b   :  { %v2307_v20 = vpop.permute.xlu0 %2306 }
 0x40c   :  { %v1770_v13 = vsel %vm824_vm3, %v1769_v11, %v2293_v10  ;;  %v1872_v14 = vsel %vm824_vm3, %v1871_v12, %v2294_v9  ;;  %v2309_v29 = vunpack.i.h.bf16 %v2307_v20  ;;  %v2308_v30 = vunpack.i.l.bf16 %v2307_v20 }
 0x40d   :  { %v2302_v19 = vpop.permute.xlu1 %2301  ;;  %v1771_v24 = vsel %vm826_vm4, %v1770_v13, %v2298_v18  ;;  %v1873_v25 = vsel %vm826_vm4, %v1872_v14, %v2299_v15 }
 0x40e   :  { %v2304_v22 = vunpack.i.h.bf16 %v2302_v19  ;;  %v2303_v23 = vunpack.i.l.bf16 %v2302_v19 }
 0x410   :  { %v1874_v26 = vsel %vm828_vm5, %v1873_v25, %v2304_v22  ;;  %v1772_v27 = vsel %vm828_vm5, %v1771_v24, %v2303_v23 }
 0x411   :  { %v2312_v31 = vpop.permute.xlu1 %2311  ;;  %v1773_v6 = vsel %vm830_vm6, %v1772_v27, %v2308_v30  ;;  %v1875_v34 = vsel %vm830_vm6, %v1874_v26, %v2309_v29 }
 0x412   :  { %v2314_v32 = vunpack.i.h.bf16 %v2312_v31  ;;  %v2313_v33 = vunpack.i.l.bf16 %v2312_v31 }
 0x414   :  { %v1774_v35 = vsel %vm832_vm7, %v1773_v6, %v2313_v33  ;;  %v1876_v36 = vsel %vm832_vm7, %v1875_v34, %v2314_v32 }
 0x415   :  { %v1775_v38 = vpack.c.bf16 %v1774_v35, %v1774_v35  ;;  %v1877_v39 = vpack.c.bf16 %v1876_v36, %v1876_v36 }
 0x417   :  { %2201 = vmatmul.mubr.msk.bf16.vlgmr.msra.gmra.mrb[20].mxu0 %vm961_vm8, %v1775_v38  ;;  %2213 = vmatmul.mubr.msk.bf16.vlgmr.msra.gmra.mrb[16].mxu1 %vm961_vm8, %v1877_v39 }
 0x4ea   :  { %v1915_v40 = vpop.f32.mrb[20].mxu0  ;;  %v1958_v41 = vpop.f32.mrb[16].mxu1 }
 0x4eb   :  { %v1964_v42 = vmul.f32 %v1915_v40, %v1915_v40  ;;  %v1965_v43 = vmul.f32 %v1958_v41, %v1958_v41  ;;  %v2202_v44 = vpop.f32.mrb[21].mxu0  ;;  %v2214_v45 = vpop.f32.mrb[17].mxu1 }
 0x4ec   :  { %v1918_v46 = vpop.f32.mrb[22].mxu0  ;;  %v1961_v48 = vpop.f32.mrb[18].mxu1 }
 0x4ed   :  { %v1966_v49 = vadd.f32 %v1965_v43, %v1964_v42  ;;  %v2203_v53 = vpop.f32.mrb[23].mxu0  ;;  %v2215_v54 = vpop.f32.mrb[19].mxu1 }
 0x4ef   :  { %2333 = vrsqrt.f32 %v1966_v49  ;;  %vm1969_vm11 = vcmp.eq.f32.partialorder %v1966_v49, inf  ;;  %v1972_v3 = vand.u32 2147483648, %v1966_v49  ;;  %vm1971_vm12 = vcmp.eq.f32.partialorder %v1966_v49, 0.0 }
 0x4f9   :  { %v2334_v55 = vpop.eup %2333 }
 0x4fa   :  { %v1968_v16 = vmul.f32 %v2334_v55, %v1966_v49 }
 0x4fc   :  { %v1970_v47 = vsel %vm1969_vm11, %v1966_v49, %v1968_v16 }
 0x4fd   :  { %v1973_v50 = vsel %vm1971_vm12, %v1972_v3, %v1970_v47 }
 0x4fe   :  { %v1974_v51 = vmul.f32 0.11111111, %v1973_v50 }
 0x500   :  { %v1982_v52 = vrot.slane %v1974_v51, %v2712_v17 }
 0x502   :  { %v1983_v56 = vcombine.high %v1982_v52, %v1982_v52  ;;  %2034 = vst.sshfl [vmem:[#allocation8 + $0x1] sm:$0x1 pattern:$0x73625140] %v1982_v52 }
 0x504   :  { %2035 = vst.sshfl [vmem:[#allocation8 + $0x3] sm:$0x1 pattern:$0x73625140] %v1983_v56 }
 0x505   :  { %2412 = shalt.err (!%p2409_p0)
}
 0x506   :  { %s2413_s17 = scalar_lea.hbm %s2780_s5, 64 }
 0x507   :  { %p2414_p1 = scmp.ne.s32.totalorder %s2780_s5, %s2413_s17  ;;  %p2417_p2 = scmp.lt.u32.totalorder %s2413_s17, %s2780_s5 }
 0x509   :  { %p2419_p3 = pnand %p2417_p2, %p2414_p1 }
 0x50b   :  { %2422 = shalt.err (!%p2419_p3)
}
 0x50c   :  { %s2449_s22 = smov 2  }
 0x50d   :  { %2013 = dma.vmem_to_hbm [thread:$0]  %s2008_s14, 64, %s2780_s5, [#allocation4], %s2443_s10, %s2443_s10, %s2449_s22  }
 0x50e   :  { %2427 = dma.done.wait [#allocation4], 64  }
 0x50f   :  { %2428 = vsyncadd [#allocation4], 4294967232 }
 0x510   :  { %2017 = vsyncpa [#allocation3], 1 }
 0x511   :  { %2018 = vsyncpa [#allocation6], 1 }
 0x512   :  { %2019 = vsyncpa [#allocation4], 1 }

// kernel: tpu_custom_call.1
= control target key start
LH: loop header
LB: loop body
LE: loop exit
PB: predicated region body
PF: predicated region fallthrough
CT: control target
= control target key end

     0   :  { %10 = vsyncpa [#allocation3], 0  ;;  %s2775_s0 = inlined_call_operand.hbm [shape: bf16[16,16], index: 0, kind: input, shape index: {}]   ;;  %s2776_s1 = inlined_call_operand.hbm [shape: bf16[16,256], index: 1, kind: input, shape index: {}]   ;;  %s2777_s2 = inlined_call_operand.vmem [shape: f32[2,128], index: 2, kind: input, shape index: {}]   ;;  %s2778_s3 = inlined_call_operand.vmem [shape: f32[2,128], index: 3, kind: input, shape index: {}]   ;;  %s2779_s4 = inlined_call_operand.hbm [shape: bf16[64,128], index: 4, kind: input, shape index: {}]   ;;  %s2780_s5 = inlined_call_operand.hbm [shape: f32[2,2,128], index: 5, kind: output, shape index: {}]  }
   0x1   :  { %11 = vsyncpa [#allocation6], 0 }
   0x2   :  { %12 = vsyncpa [#allocation4], 0  ;;  %s2429_s18 = smov [#allocation5]   ;;  %s2335_s22 = scalar_lea.hbm %s2776_s1, 256 }
   0x3   :  { %s30_s19 = sshll.u32 %s2429_s18, 4  ;;  %p2336_p0 = scmp.ne.s32.totalorder %s2776_s1, %s2335_s22  ;;  %s31_s19 = int_to_ptr.vmem [resolvable:$true] %s30_s19 }
   0x4   :  { %p2339_p1 = scmp.lt.u32.totalorder %s2335_s22, %s2776_s1 }
   0x6   :  { %p2341_p2 = pnand %p2339_p1, %p2336_p0 }
   0x8   :  { %2344 = shalt.err (!%p2341_p2)
}
   0x9   :  { %s2345_s27 = scalar_lea.vmem %s31_s19, 256  ;;  %p2350_p4 = scmp.lt.s32.totalorder %s31_s19, %s31_s19 }
   0xa   :  { %p2346_p3 = scmp.ne.s32.totalorder %s31_s19, %s2345_s27  ;;  %p2351_p5 = scmp.lt.s32.totalorder %s2345_s27, %s2345_s27 }
   0xc   :  { %p2352_p6 = por %p2351_p5, %p2350_p4 }
   0xe   :  { %p2353_p7 = pnand %p2352_p6, %p2346_p3 }
  0x10   :  { %2356 = shalt.err (!%p2353_p7)
}
  0x11   :  { %s2430_s28 = smov 128   ;;  %s2431_s29 = smov 8  }
  0x12   :  { %36 = dma.hbm_to_vmem [thread:$0]  %s2776_s1, 256, %s31_s19, [#allocation6], %s2430_s28, %s2430_s28, %s2431_s29  }
  0x13   :  { %s2432_s7 = smov [#allocation2]   ;;  %s2357_s11 = scalar_lea.hbm %s2775_s0, 128 }
  0x14   :  { %s18_s8 = sshll.u32 %s2432_s7, 4  ;;  %p2358_p8 = scmp.ne.s32.totalorder %s2775_s0, %s2357_s11  ;;  %s19_s8 = int_to_ptr.vmem [resolvable:$true] %s18_s8 }
  0x15   :  { %p2361_p9 = scmp.lt.u32.totalorder %s2357_s11, %s2775_s0 }
  0x17   :  { %p2363_p10 = pnand %p2361_p9, %p2358_p8 }
  0x19   :  { %2366 = shalt.err (!%p2363_p10)
}
  0x1a   :  { %s2367_s16 = scalar_lea.vmem %s19_s8, 128  ;;  %p2372_p12 = scmp.lt.s32.totalorder %s19_s8, %s19_s8 }
  0x1b   :  { %p2368_p11 = scmp.ne.s32.totalorder %s19_s8, %s2367_s16  ;;  %p2373_p13 = scmp.lt.s32.totalorder %s2367_s16, %s2367_s16 }
  0x1d   :  { %p2374_p0 = por %p2373_p13, %p2372_p12 }
  0x1f   :  { %p2375_p1 = pnand %p2374_p0, %p2368_p11 }
  0x21   :  { %2378 = shalt.err (!%p2375_p1)
}
  0x22   :  { %s2433_s1 = smov 64   ;;  %s2434_s17 = smov 4  }
  0x23   :  { %24 = dma.hbm_to_vmem [thread:$0]  %s2775_s0, 128, %s19_s8, [#allocation3], %s2433_s1, %s2433_s1, %s2434_s17  }
  0x24   :  { %s2435_s20 = smov [#allocation7]   ;;  %s2379_s24 = scalar_lea.hbm %s2779_s4, 512 }
  0x25   :  { %s46_s21 = sshll.u32 %s2435_s20, 4  ;;  %p2380_p2 = scmp.ne.s32.totalorder %s2779_s4, %s2379_s24  ;;  %s47_s21 = int_to_ptr.vmem [resolvable:$true] %s46_s21 }
  0x26   :  { %p2383_p3 = scmp.lt.u32.totalorder %s2379_s24, %s2779_s4 }
  0x28   :  { %p2385_p4 = pnand %p2383_p3, %p2380_p2 }
  0x2a   :  { %2388 = shalt.err (!%p2385_p4)
}
  0x2b   :  { %s2389_s30 = scalar_lea.vmem %s47_s21, 512  ;;  %p2394_p6 = scmp.lt.s32.totalorder %s47_s21, %s47_s21 }
  0x2c   :  { %p2390_p5 = scmp.ne.s32.totalorder %s47_s21, %s2389_s30  ;;  %p2395_p7 = scmp.lt.s32.totalorder %s2389_s30, %s2389_s30 }
  0x2e   :  { %p2396_p8 = por %p2395_p7, %p2394_p6 }
  0x30   :  { %p2397_p9 = pnand %p2396_p8, %p2390_p5 }
  0x32   :  { %2400 = shalt.err (!%p2397_p9)
}
  0x33   :  { %52 = dma.hbm_to_vmem [thread:$0]  %s2779_s4, 512, %s47_s21, [#allocation6], %s2433_s1, %s2433_s1, %s2434_s17  }
  0x34   :  { %2423 = dma.done.wait [#allocation3], 128  }
  0x35   :  { %2424 = vsyncadd [#allocation3], 4294967168 }
  0x36   :  { %2425 = dma.done.wait [#allocation6], 768  }
  0x37   :  { %2426 = vsyncadd [#allocation6], 4294966528  ;;  %v2436_v0 = vmov 0   ;;  %v2315_v1 = vld [vmem:[#allocation5 + $0x4] ss:$8 sps:$4 sm:$0xff]   ;;  %v2318_v3 = vld [vmem:[#allocation2] sm:$0xff]   ;;  %v139_v5 = vlaneseq }
  0x38   :  { %118 = vmatprep.mubr.bf16.mxu0 %v2436_v0  ;;  %v2317_v2 = vld [vmem:[#allocation5] ss:$8 sps:$4 sm:$0xff]   ;;  %86 = vmatprep.subr.bf16.mxu0 %v2315_v1  ;;  %vm82_vm0 = vcmask 130048   ;;  %v2437_v4 = vmov 0.0   ;;  %vm2438_vm1 = vmmov 0   ;;  %v2566_v55 = vld [vmem:[#allocation7] sm:$0xff]  }
  0x39   :  { %87 = vmatpush1.bf16.msra.mxu0 %v2317_v2  ;;  %2088 = vmatprep.subr.mxu1 %v2437_v4  ;;  %v2524_v6 = vshrl.u32 %v139_v5, 7  ;;  %v129_v9 = vld [vmem:[%s2777_s2] sm:$0x3]  ;;  %v2439_v57 = vmov 1983009808   ;;  %s2441_s2 = smov 16  }
  0x3a   :  { %2108 = vmatprep.subr.mxu0 %v2437_v4  ;;  %2090 = vmatprep.mubr.msk.f32.mxu1 %vm2438_vm1, %v2437_v4  ;;  %v130_v10 = vld [vmem:[%s2778_s3] sm:$0x3]  ;;  %v729_v58 = vunpack.c.l.s4 %v2439_v57  ;;  %v2440_v63 = vmov 1934713408   ;;  %s2442_s3 = smov 24   ;;  %s2443_s10 = smov 32  }
  0x3b   :  { %v141_v7 = vsub.s32 0, %v2524_v6  ;;  %v1088_v8 = vsub.s32 1, %v2524_v6  ;;  %v760_v0 = vunpack.c.l.s4 %v2440_v63  ;;  %s2444_s11 = smov 40   ;;  %s2445_s12 = smov 48   ;;  %vm821_vm2 = vcmask 64512  }
  0x3c   :  { %2023 = vmatmul.mubr.msk.bf16.vlgmr.msra.gmra.mrb[0].mxu0 %vm82_vm0, %v2318_v3  ;;  %v730_v61 = vunpack.c.0.s8 %v729_v58  ;;  %s2446_s13 = smov 56   ;;  %vm824_vm3 = vcmask 195584   ;;  %vm826_vm4 = vcmask 261120   ;;  %vm828_vm5 = vcmask 326656  }
  0x3d   :  { %2110 = vmatprep.mubr.msk.f32.mxu0 %vm2438_vm1, %v2437_v4  ;;  %v142_v11 = vrot.slane %v129_v9, %v141_v7  ;;  %v1089_v12 = vrot.slane %v129_v9, %v1088_v8  ;;  %v148_v13 = vrot.slane %v130_v10, %v141_v7  ;;  %v1095_v14 = vrot.slane %v130_v10, %v1088_v8 }
  0x3e   :  { %v2573_v3 = vsub.s32 %v730_v61, %v2524_v6  ;;  %v761_v10 = vunpack.c.0.s8 %v760_v0  ;;  %vm830_vm6 = vcmask 392192   ;;  %vm832_vm7 = vcmask 457728  }
  0x3f   :  { %vm961_vm8 = vcmask 523264  }
 0x10f   :  { %v120_v15 = vpop.f32.mrb[0].mxu0 }
 0x110   :  { %v143_v16 = vmul.f32 %v142_v11, %v120_v15  ;;  %v1090_v17 = vmul.f32 %v1089_v12, %v120_v15  ;;  %v122_v18 = vpop.f32.mrb[1].mxu0 }
 0x111   :  { %v149_v19 = vmul.f32 %v148_v13, %v122_v18  ;;  %v1096_v20 = vmul.f32 %v1095_v14, %v122_v18  ;;  %v124_v21 = vpop.f32.mrb[2].mxu0 }
 0x112   :  { %v151_v22 = vmul.f32 %v143_v16, %v143_v16  ;;  %v1098_v23 = vmul.f32 %v1090_v17, %v1090_v17  ;;  %v144_v24 = vmul.f32 %v142_v11, %v124_v21  ;;  %v1091_v25 = vmul.f32 %v1089_v12, %v124_v21  ;;  %v126_v26 = vpop.f32.mrb[3].mxu0 }
 0x113   :  { %v153_v27 = vmul.f32 %v149_v19, %v149_v19  ;;  %v1100_v28 = vmul.f32 %v1096_v20, %v1096_v20  ;;  %v150_v29 = vmul.f32 %v148_v13, %v126_v26  ;;  %v1097_v30 = vmul.f32 %v1095_v14, %v126_v26 }
 0x114   :  { %v152_v31 = vmul.f32 %v144_v24, %v144_v24  ;;  %v1099_v32 = vmul.f32 %v1091_v25, %v1091_v25  ;;  %v2586_v21 = vsub.s32 %v761_v10, %v2524_v6 }
 0x115   :  { %v155_v33 = vadd.f32 %v153_v27, %v151_v22  ;;  %v1102_v34 = vadd.f32 %v1100_v28, %v1098_v23  ;;  %v154_v35 = vmul.f32 %v150_v29, %v150_v29  ;;  %v1101_v36 = vmul.f32 %v1097_v30, %v1097_v30  ;;  %v2591_v28 = vld [vmem:[#allocation7 + $0x10] sm:$0xff]  }
 0x117   :  { %v157_v37 = vadd.f32 1e-12, %v155_v33  ;;  %v1104_v38 = vadd.f32 1e-12, %v1102_v34  ;;  %v156_v39 = vadd.f32 %v154_v35, %v152_v31  ;;  %v1103_v40 = vadd.f32 %v1101_v36, %v1099_v32 }
 0x119   :  { %2323 = vrsqrt.f32 %v157_v37  ;;  %v158_v41 = vadd.f32 1e-12, %v156_v39  ;;  %v1105_v42 = vadd.f32 1e-12, %v1103_v40  ;;  %v2603_v37 = vld [vmem:[#allocation7 + $0x18] sm:$0xff]  }
 0x11a   :  { %2325 = vrsqrt.f32 %v1104_v38 }
 0x11b   :  { %2327 = vrsqrt.f32 %v158_v41 }
 0x11c   :  { %2329 = vrsqrt.f32 %v1105_v42 }
 0x123   :  { %v2324_v43 = vpop.eup %2323 }
 0x124   :  { %v2326_v44 = vpop.eup %2325  ;;  %v163_v45 = vmul.f32 %v2324_v43, %v149_v19  ;;  %v161_v46 = vmul.f32 %v2324_v43, %v143_v16  ;;  %v2579_v16 = vld [vmem:[#allocation7 + $0x8] sm:$0xff]  }
 0x125   :  { %v2328_v47 = vpop.eup %2327  ;;  %v2534_v48 = vmul.f32 %v2326_v44, %v1096_v20  ;;  %v2536_v49 = vmul.f32 %v2326_v44, %v1090_v17 }
 0x126   :  { %v2330_v50 = vpop.eup %2329  ;;  %v164_v51 = vmul.f32 %v2328_v47, %v150_v29  ;;  %2089 = vmatpush3.xpose.msra.mxu1 %v163_v45  ;;  %2109 = vmatpush3.xpose.msra.mxu0 %v161_v46  ;;  %v162_v52 = vmul.f32 %v2328_v47, %v144_v24 }
 0x127   :  { %v2538_v53 = vmul.f32 %v2330_v50, %v1097_v30  ;;  %2093 = vmatprep.subr.mxu1 %v2437_v4  ;;  %2113 = vmatprep.subr.mxu0 %v2437_v4  ;;  %v2542_v54 = vmul.f32 %v2330_v50, %v1091_v25 }
 0x129   :  { %2091 = vmatmul.mubr.f32.vlgmr.msra.gmra.mrb[0].mxu1 %v163_v45  ;;  %2111 = vmatmul.mubr.f32.vlgmr.msra.gmra.mrb[4].mxu0 %v163_v45 }
 0x12a   :  { %2094 = vmatpush3.xpose.msra.mxu1 %v164_v51  ;;  %2114 = vmatpush3.xpose.msra.mxu0 %v162_v52 }
 0x12b   :  { %2095 = vmatprep.mubr.msk.f32.mxu1 %vm2438_vm1, %v2437_v4  ;;  %2115 = vmatprep.mubr.msk.f32.mxu0 %vm2438_vm1, %v2437_v4 }
 0x12c   :  { %2098 = vmatprep.subr.mxu1 %v2437_v4  ;;  %2118 = vmatprep.subr.mxu0 %v2437_v4 }
 0x12d   :  { %2096 = vmatmul.mubr.f32.vlgmr.msra.gmra.mrb[2].mxu1 %v164_v51  ;;  %2116 = vmatmul.mubr.f32.vlgmr.msra.gmra.mrb[6].mxu0 %v164_v51 }
 0x12e   :  { %2099 = vmatpush3.xpose.msra.mxu1 %v161_v46  ;;  %2119 = vmatpush3.xpose.msra.mxu0 %v163_v45 }
 0x12f   :  { %2100 = vmatprep.mubr.msk.f32.mxu1 %vm2438_vm1, %v2437_v4  ;;  %2120 = vmatprep.mubr.msk.f32.mxu0 %vm2438_vm1, %v2437_v4 }
 0x130   :  { %2103 = vmatprep.subr.mxu1 %v2437_v4  ;;  %2128 = vmatprep.subr.bf16.mxu0 %v2437_v4 }
 0x131   :  { %2101 = vmatmul.mubr.f32.vlgmr.msra.gmra.mrb[0].mxu1 %v161_v46  ;;  %2121 = vmatmul.mubr.f32.vlgmr.msra.gmra.mrb[8].mxu0 %v161_v46 }
 0x132   :  { %2104 = vmatpush3.xpose.msra.mxu1 %v162_v52  ;;  %2105 = vmatprep.mubr.msk.f32.mxu1 %vm2438_vm1, %v2437_v4 }
 0x133   :  { %2123 = vmatprep.subr.mxu1 %v2437_v4  ;;  %2136 = vmatprep.mubr.msk.bf16.mxu0 %vm2438_vm1, %v2437_v4 }
 0x134   :  { %2129 = vmatpush3.bf16.msra.mxu0 %v2566_v55 }
 0x135   :  { %2106 = vmatmul.mubr.f32.vlgmr.msra.gmra.mrb[2].mxu1 %v162_v52  ;;  %2130 = vmatprep.subr.bf16.mxu0 %v2437_v4 }
 0x136   :  { %2124 = vmatpush3.xpose.msra.mxu1 %v164_v51  ;;  %2125 = vmatprep.mubr.msk.f32.mxu1 %vm2438_vm1, %v2437_v4 }
 0x137   :  { %2140 = vmatprep.subr.bf16.mxu1 %v2437_v4 }
 0x138   :  { %2131 = vmatpush3.bf16.msra.mxu0 %v2579_v16 }
 0x139   :  { %2126 = vmatmul.mubr.f32.vlgmr.msra.gmra.mrb[4].mxu1 %v162_v52  ;;  %2132 = vmatprep.subr.bf16.mxu0 %v2437_v4 }
 0x13a   :  { %2148 = vmatprep.mubr.msk.bf16.mxu1 %vm2438_vm1, %v2437_v4  ;;  %2141 = vmatpush3.bf16.msra.mxu1 %v2566_v55 }
 0x13b   :  { %2142 = vmatprep.subr.bf16.mxu1 %v2437_v4 }
 0x13c   :  { %2133 = vmatpush3.bf16.msra.mxu0 %v2591_v28 }
 0x13d   :  { %2134 = vmatprep.subr.bf16.mxu0 %v2437_v4 }
 0x13e   :  { %2143 = vmatpush3.bf16.msra.mxu1 %v2579_v16 }
 0x13f   :  { %2144 = vmatprep.subr.bf16.mxu1 %v2437_v4 }
 0x140   :  { %2135 = vmatpush3.bf16.msra.mxu0 %v2603_v37 }
 0x141   :  { %2152 = vmatprep.subr.mxu0 %v2437_v4 }
 0x142   :  { %2145 = vmatpush3.bf16.msra.mxu1 %v2591_v28 }
 0x143   :  { %2146 = vmatprep.subr.bf16.mxu1 %v2437_v4 }
 0x146   :  { %2147 = vmatpush3.bf16.msra.mxu1 %v2603_v37 }
 0x147   :  { %2157 = vmatprep.subr.mxu1 %v2437_v4 }
 0x1fc   :  { %v511_v56 = vpop.f32.mrb[4].mxu0 }
 0x1fd   :  { %v2112_v59 = vpop.f32.mrb[5].mxu0 }
 0x200   :  { %v581_v60 = vpop.f32.mrb[6].mxu0 }
 0x201   :  { %v2117_v62 = vpop.f32.mrb[7].mxu0 }
 0x204   :  { %v371_v1 = vpop.f32.mrb[0].mxu1  ;;  %v651_v2 = vpop.f32.mrb[8].mxu0 }
 0x205   :  { %v725_v5 = vsub.f32 %v511_v56, %v651_v2  ;;  %v2102_v7 = vpop.f32.mrb[1].mxu1  ;;  %v2122_v8 = vpop.f32.mrb[9].mxu0  ;;  %v727_v9 = vcombine.high %v371_v1, %v2437_v4  ;;  %v734_v12 = vrot.slane %v371_v1, %v2573_v3 }
 0x207   :  { %v741_v17 = vrot.slane %v727_v9, %v2573_v3  ;;  %v835_v23 = vcombine.high %v725_v5, %v2437_v4  ;;  %v842_v29 = vrot.slane %v725_v5, %v2573_v3 }
 0x208   :  { %v441_v11 = vpop.f32.mrb[2].mxu1 }
 0x209   :  { %v742_v13 = vcombine.high %v441_v11, %v2437_v4  ;;  %v749_v14 = vrot.slane %v441_v11, %v2573_v3  ;;  %v2107_v15 = vpop.f32.mrb[3].mxu1  ;;  %v849_v33 = vrot.slane %v835_v23, %v2573_v3 }
 0x20b   :  { %v756_v18 = vrot.slane %v742_v13, %v2573_v3  ;;  %v757_v19 = vcombine.low %v734_v12, %v749_v14  ;;  %v758_v20 = vcombine.high %v734_v12, %v749_v14 }
 0x20c   :  { %v721_v22 = vpop.f32.mrb[4].mxu1 }
 0x20d   :  { %v773_v24 = vcombine.low %v741_v17, %v756_v18  ;;  %v774_v25 = vcombine.high %v741_v17, %v756_v18  ;;  %v726_v26 = vsub.f32 %v581_v60, %v721_v22  ;;  %v2127_v27 = vpop.f32.mrb[5].mxu1  ;;  %v772_v32 = vrot.slane %v758_v20, %v2586_v21 }
 0x20e   :  { %v765_v38 = vrot.slane %v757_v19, %v2586_v21 }
 0x20f   :  { %v850_v30 = vcombine.high %v726_v26, %v2437_v4  ;;  %v857_v31 = vrot.slane %v726_v26, %v2573_v3  ;;  %v781_v39 = vrot.slane %v773_v24, %v2586_v21  ;;  %v790_v44 = vcombine.high %v772_v32, %v2437_v4 }
 0x210   :  { %v788_v45 = vrot.slane %v774_v25, %v2586_v21  ;;  %v789_v52 = vcombine.high %v765_v38, %v2437_v4 }
 0x211   :  { %v864_v34 = vrot.slane %v850_v30, %v2573_v3  ;;  %v865_v35 = vcombine.low %v842_v29, %v857_v31  ;;  %v866_v36 = vcombine.high %v842_v29, %v857_v31  ;;  %v791_v59 = vcombine.high %v781_v39, %v2437_v4 }
 0x212   :  { %v792_v62 = vcombine.high %v788_v45, %v2437_v4 }
 0x213   :  { %v881_v40 = vcombine.low %v849_v33, %v864_v34  ;;  %v882_v41 = vcombine.high %v849_v33, %v864_v34  ;;  %v880_v42 = vrot.slane %v866_v36, %v2586_v21  ;;  %v873_v43 = vrot.slane %v865_v35, %v2586_v21 }
 0x215   :  { %v2245_v46 = vpack.i.bf16 %v880_v42, %v772_v32  ;;  %v898_v47 = vcombine.high %v880_v42, %v2437_v4  ;;  %v897_v50 = vcombine.high %v873_v43, %v2437_v4  ;;  %v889_v51 = vrot.slane %v881_v40, %v2586_v21 }
 0x216   :  { %v896_v56 = vrot.slane %v882_v41, %v2586_v21 }
 0x217   :  { %2246 = vrot.lane.b32.xlu0 %v2245_v46, %s2441_s2  ;;  %v2255_v57 = vpack.i.bf16 %v898_v47, %v790_v44  ;;  %v2260_v58 = vpack.i.bf16 %v889_v51, %v781_v39  ;;  %v899_v60 = vcombine.high %v889_v51, %v2437_v4  ;;  %v2250_v0 = vpack.i.bf16 %v897_v50, %v789_v52 }
 0x218   :  { %v2265_v61 = vpack.i.bf16 %v896_v56, %v788_v45  ;;  %v900_v63 = vcombine.high %v896_v56, %v2437_v4 }
 0x219   :  { %2256 = vrot.lane.b32.xlu1 %v2255_v57, %s2442_s3  ;;  %v2270_v1 = vpack.i.bf16 %v899_v60, %v791_v59 }
 0x21a   :  { %v2275_v2 = vpack.i.bf16 %v900_v63, %v792_v62 }
 0x21b   :  { %2251 = vrot.lane.b32.xlu0 %v2250_v0, %s2431_s29 }
 0x21d   :  { %2261 = vrot.lane.b32.xlu1 %v2260_v58, %s2443_s10 }
 0x21f   :  { %2271 = vrot.lane.b32.xlu0 %v2270_v1, %s2444_s11 }
 0x221   :  { %2266 = vrot.lane.b32.xlu1 %v2265_v61, %s2445_s12 }
 0x223   :  { %2276 = vrot.lane.b32.xlu0 %v2275_v2, %s2446_s13 }
 0x289   :  { %v2247_v5 = vpop.permute.xlu0 %2246 }
 0x28a   :  { %v2249_v11 = vunpack.i.h.bf16 %v2247_v5  ;;  %v2248_v12 = vunpack.i.l.bf16 %v2247_v5 }
 0x28b   :  { %v2257_v7 = vpop.permute.xlu1 %2256 }
 0x28c   :  { %v2259_v13 = vunpack.i.h.bf16 %v2257_v7  ;;  %v2258_v14 = vunpack.i.l.bf16 %v2257_v7 }
 0x28d   :  { %v2252_v8 = vpop.permute.xlu0 %2251 }
 0x28e   :  { %v2254_v9 = vunpack.i.h.bf16 %v2252_v8  ;;  %v2253_v10 = vunpack.i.l.bf16 %v2252_v8 }
 0x28f   :  { %v2262_v15 = vpop.permute.xlu1 %2261 }
 0x290   :  { %v929_v17 = vsel %vm821_vm2, %v873_v43, %v2254_v9  ;;  %v822_v18 = vsel %vm821_vm2, %v765_v38, %v2253_v10  ;;  %v2264_v19 = vunpack.i.h.bf16 %v2262_v15  ;;  %v2263_v20 = vunpack.i.l.bf16 %v2262_v15 }
 0x291   :  { %v930_v22 = vsel %vm82_vm0, %v929_v17, %v2249_v11  ;;  %v823_v23 = vsel %vm82_vm0, %v822_v18, %v2248_v12  ;;  %v2272_v24 = vpop.permute.xlu0 %2271 }
 0x292   :  { %v825_v25 = vsel %vm824_vm3, %v823_v23, %v2258_v14  ;;  %v931_v26 = vsel %vm824_vm3, %v930_v22, %v2259_v13  ;;  %v2274_v27 = vunpack.i.h.bf16 %v2272_v24  ;;  %v2273_v29 = vunpack.i.l.bf16 %v2272_v24 }
 0x293   :  { %v932_v30 = vsel %vm826_vm4, %v931_v26, %v2264_v19  ;;  %v827_v31 = vsel %vm826_vm4, %v825_v25, %v2263_v20  ;;  %v2267_v32 = vpop.permute.xlu1 %2266 }
 0x294   :  { %v933_v33 = vsel %vm828_vm5, %v932_v30, %v2274_v27  ;;  %v829_v34 = vsel %vm828_vm5, %v827_v31, %v2273_v29  ;;  %v2269_v35 = vunpack.i.h.bf16 %v2267_v32  ;;  %v2268_v36 = vunpack.i.l.bf16 %v2267_v32 }
 0x295   :  { %v2277_v38 = vpop.permute.xlu0 %2276 }
 0x296   :  { %v831_v39 = vsel %vm830_vm6, %v829_v34, %v2268_v36  ;;  %v934_v40 = vsel %vm830_vm6, %v933_v33, %v2269_v35  ;;  %v2279_v41 = vunpack.i.h.bf16 %v2277_v38  ;;  %v2278_v42 = vunpack.i.l.bf16 %v2277_v38 }
 0x298   :  { %v833_v43 = vsel %vm832_vm7, %v831_v39, %v2278_v42  ;;  %v935_v44 = vsel %vm832_vm7, %v934_v40, %v2279_v41 }
 0x299   :  { %v834_v45 = vpack.c.bf16 %v833_v43, %v833_v43  ;;  %v936_v46 = vpack.c.bf16 %v935_v44, %v935_v44 }
 0x29b   :  { %2137 = vmatmul.mubr.msk.bf16.vlgmr.msra.gmra.mrb[12].mxu0 %vm961_vm8, %v834_v45  ;;  %2149 = vmatmul.mubr.msk.bf16.vlgmr.msra.gmra.mrb[8].mxu1 %vm961_vm8, %v936_v46 }
 0x29c   :  { %2153 = vmatpush3.xpose.msra.mxu0 %v2534_v48  ;;  %2158 = vmatpush3.xpose.msra.mxu1 %v2538_v53 }
 0x29d   :  { %2154 = vmatprep.mubr.msk.f32.mxu0 %vm2438_vm1, %v2437_v4  ;;  %2159 = vmatprep.mubr.msk.f32.mxu1 %vm2438_vm1, %v2437_v4 }
 0x29e   :  { %2162 = vmatprep.subr.mxu0 %v2437_v4  ;;  %2167 = vmatprep.subr.mxu1 %v2437_v4 }
 0x2a3   :  { %2155 = vmatmul.mubr.f32.vlgmr.msra.gmra.mrb[10].mxu0 %v2534_v48  ;;  %2160 = vmatmul.mubr.f32.vlgmr.msra.gmra.mrb[6].mxu1 %v2538_v53 }
 0x2a4   :  { %2163 = vmatpush3.xpose.msra.mxu0 %v2536_v49  ;;  %2168 = vmatpush3.xpose.msra.mxu1 %v2542_v54 }
 0x2a5   :  { %2164 = vmatprep.mubr.msk.f32.mxu0 %vm2438_vm1, %v2437_v4  ;;  %2169 = vmatprep.mubr.msk.f32.mxu1 %vm2438_vm1, %v2437_v4 }
 0x2a6   :  { %2172 = vmatprep.subr.mxu0 %v2437_v4  ;;  %2177 = vmatprep.subr.mxu1 %v2437_v4 }
 0x2ab   :  { %2165 = vmatmul.mubr.f32.vlgmr.msra.gmra.mrb[10].mxu0 %v2536_v49  ;;  %2170 = vmatmul.mubr.f32.vlgmr.msra.gmra.mrb[6].mxu1 %v2542_v54 }
 0x2ac   :  { %2173 = vmatpush3.xpose.msra.mxu0 %v2536_v49  ;;  %2178 = vmatpush3.xpose.msra.mxu1 %v2542_v54 }
 0x2ad   :  { %2174 = vmatprep.mubr.msk.f32.mxu0 %vm2438_vm1, %v2437_v4  ;;  %2179 = vmatprep.mubr.msk.f32.mxu1 %vm2438_vm1, %v2437_v4 }
 0x2ae   :  { %2182 = vmatprep.subr.mxu0 %v2437_v4  ;;  %2187 = vmatprep.subr.mxu1 %v2437_v4 }
 0x2af   :  { %2175 = vmatmul.mubr.f32.vlgmr.msra.gmra.mrb[16].mxu0 %v2534_v48  ;;  %2180 = vmatmul.mubr.f32.vlgmr.msra.gmra.mrb[12].mxu1 %v2538_v53 }
 0x2b0   :  { %2183 = vmatpush3.xpose.msra.mxu0 %v2534_v48  ;;  %2188 = vmatpush3.xpose.msra.mxu1 %v2538_v53 }
 0x2b1   :  { %2184 = vmatprep.mubr.msk.f32.mxu0 %vm2438_vm1, %v2437_v4  ;;  %2189 = vmatprep.mubr.msk.f32.mxu1 %vm2438_vm1, %v2437_v4 }
 0x2b2   :  { %2192 = vmatprep.subr.bf16.mxu0 %v2437_v4  ;;  %2204 = vmatprep.subr.bf16.mxu1 %v2437_v4 }
 0x2b3   :  { %2185 = vmatmul.mubr.f32.vlgmr.msra.gmra.mrb[18].mxu0 %v2536_v49  ;;  %2190 = vmatmul.mubr.f32.vlgmr.msra.gmra.mrb[14].mxu1 %v2542_v54 }
 0x2b4   :  { %2193 = vmatpush3.bf16.msra.mxu0 %v2566_v55  ;;  %2205 = vmatpush3.bf16.msra.mxu1 %v2566_v55 }
 0x2b5   :  { %2194 = vmatprep.subr.bf16.mxu0 %v2437_v4  ;;  %2206 = vmatprep.subr.bf16.mxu1 %v2437_v4 }
 0x2b6   :  { %2200 = vmatprep.mubr.msk.bf16.mxu0 %vm2438_vm1, %v2437_v4  ;;  %2212 = vmatprep.mubr.msk.bf16.mxu1 %vm2438_vm1, %v2437_v4 }
 0x2b8   :  { %2195 = vmatpush3.bf16.msra.mxu0 %v2579_v16  ;;  %2207 = vmatpush3.bf16.msra.mxu1 %v2579_v16 }
 0x2b9   :  { %2196 = vmatprep.subr.bf16.mxu0 %v2437_v4  ;;  %2208 = vmatprep.subr.bf16.mxu1 %v2437_v4 }
 0x2bc   :  { %2197 = vmatpush3.bf16.msra.mxu0 %v2591_v28  ;;  %2209 = vmatpush3.bf16.msra.mxu1 %v2591_v28  ;;  %v2447_v28 = vmov 1966171168  }
 0x2bd   :  { %2198 = vmatprep.subr.bf16.mxu0 %v2437_v4  ;;  %2210 = vmatprep.subr.bf16.mxu1 %v2437_v4  ;;  %v1061_v57 = vunpack.c.l.s4 %v2447_v28 }
 0x2c0   :  { %2199 = vmatpush3.bf16.msra.mxu0 %v2603_v37  ;;  %2211 = vmatpush3.bf16.msra.mxu1 %v2603_v37  ;;  %v1062_v37 = vunpack.c.0.s8 %v1061_v57 }
 0x2c2   :  { %v2712_v17 = vsub.s32 %v1062_v37, %v2524_v6 }
 0x36e   :  { %v999_v48 = vpop.f32.mrb[12].mxu0  ;;  %v1042_v49 = vpop.f32.mrb[8].mxu1 }
 0x36f   :  { %v1048_v53 = vmul.f32 %v999_v48, %v999_v48  ;;  %v1049_v54 = vmul.f32 %v1042_v49, %v1042_v49  ;;  %v2138_v55 = vpop.f32.mrb[13].mxu0  ;;  %v2150_v16 = vpop.f32.mrb[9].mxu1 }
 0x370   :  { %v1002_v47 = vpop.f32.mrb[14].mxu0  ;;  %v1045_v50 = vpop.f32.mrb[10].mxu1 }
 0x371   :  { %v1050_v51 = vadd.f32 %v1049_v54, %v1048_v53  ;;  %v2139_v52 = vpop.f32.mrb[15].mxu0  ;;  %v2151_v56 = vpop.f32.mrb[11].mxu1 }
 0x373   :  { %2331 = vrsqrt.f32 %v1050_v51  ;;  %vm1053_vm9 = vcmp.eq.f32.partialorder %v1050_v51, inf  ;;  %vm1055_vm10 = vcmp.eq.f32.partialorder %v1050_v51, 0.0  ;;  %v1056_v8 = vand.u32 2147483648, %v1050_v51 }
 0x37d   :  { %v2332_v58 = vpop.eup %2331 }
 0x37e   :  { %v1052_v59 = vmul.f32 %v2332_v58, %v1050_v51  ;;  %v1318_v60 = vpop.f32.mrb[10].mxu0  ;;  %v1388_v61 = vpop.f32.mrb[6].mxu1 }
 0x37f   :  { %v1674_v62 = vcombine.high %v1318_v60, %v2437_v4  ;;  %v1681_v63 = vrot.slane %v1318_v60, %v2573_v3  ;;  %v1689_v0 = vcombine.high %v1388_v61, %v2437_v4  ;;  %v1696_v1 = vrot.slane %v1388_v61, %v2573_v3  ;;  %v2166_v2 = vpop.f32.mrb[11].mxu0  ;;  %v2171_v5 = vpop.f32.mrb[7].mxu1 }
 0x380   :  { %v1054_v7 = vsel %vm1053_vm9, %v1050_v51, %v1052_v59 }
 0x381   :  { %v1688_v9 = vrot.slane %v1674_v62, %v2573_v3  ;;  %v1703_v10 = vrot.slane %v1689_v0, %v2573_v3  ;;  %v1704_v11 = vcombine.low %v1681_v63, %v1696_v1  ;;  %v1705_v12 = vcombine.high %v1681_v63, %v1696_v1 }
 0x382   :  { %v1458_v13 = vpop.f32.mrb[16].mxu0  ;;  %v1528_v14 = vpop.f32.mrb[12].mxu1  ;;  %v1057_v15 = vsel %vm1055_vm10, %v1056_v8, %v1054_v7 }
 0x383   :  { %v1720_v18 = vcombine.low %v1688_v9, %v1703_v10  ;;  %v1721_v19 = vcombine.high %v1688_v9, %v1703_v10  ;;  %v2176_v20 = vpop.f32.mrb[17].mxu0  ;;  %v2181_v22 = vpop.f32.mrb[13].mxu1  ;;  %v1058_v23 = vmul.f32 0.11111111, %v1057_v15  ;;  %v1719_v36 = vrot.slane %v1705_v12, %v2586_v21 }
 0x384   :  { %v1712_v38 = vrot.slane %v1704_v11, %v2586_v21 }
 0x385   :  { %v1066_v26 = vrot.slane %v1058_v23, %v2712_v17  ;;  %v1728_v43 = vrot.slane %v1720_v18, %v2586_v21  ;;  %v1737_v53 = vcombine.high %v1719_v36, %v2437_v4  ;;  %v1735_v54 = vrot.slane %v1721_v19, %v2586_v21 }
 0x386   :  { %v1598_v24 = vpop.f32.mrb[18].mxu0  ;;  %v1668_v25 = vpop.f32.mrb[14].mxu1  ;;  %v1736_v49 = vcombine.high %v1712_v38, %v2437_v4 }
 0x387   :  { %v1672_v27 = vsub.f32 %v1458_v13, %v1598_v24  ;;  %v1673_v29 = vsub.f32 %v1528_v14, %v1668_v25  ;;  %v2186_v30 = vpop.f32.mrb[19].mxu0  ;;  %v2191_v31 = vpop.f32.mrb[15].mxu1  ;;  %v1067_v32 = vcombine.high %v1066_v26, %v1066_v26  ;;  %2030 = vst.sshfl [vmem:[#allocation8] sm:$0x1 pattern:$0x73625140] %v1066_v26  ;;  %v1738_v51 = vcombine.high %v1728_v43, %v2437_v4 }
 0x388   :  { %v1739_v59 = vcombine.high %v1735_v54, %v2437_v4 }
 0x389   :  { %v1776_v33 = vcombine.high %v1672_v27, %v2437_v4  ;;  %v1783_v6 = vrot.slane %v1672_v27, %v2573_v3  ;;  %v1791_v34 = vcombine.high %v1673_v29, %v2437_v4  ;;  %v1798_v35 = vrot.slane %v1673_v29, %v2573_v3  ;;  %2031 = vst.sshfl [vmem:[#allocation8 + $0x2] sm:$0x1 pattern:$0x73625140] %v1067_v32 }
 0x38b   :  { %v1790_v39 = vrot.slane %v1776_v33, %v2573_v3  ;;  %v1805_v40 = vrot.slane %v1791_v34, %v2573_v3  ;;  %v1806_v41 = vcombine.low %v1783_v6, %v1798_v35  ;;  %v1807_v42 = vcombine.high %v1783_v6, %v1798_v35 }
 0x38d   :  { %v1822_v44 = vcombine.low %v1790_v39, %v1805_v40  ;;  %v1823_v45 = vcombine.high %v1790_v39, %v1805_v40  ;;  %v1821_v46 = vrot.slane %v1807_v42, %v2586_v21  ;;  %v1814_v48 = vrot.slane %v1806_v41, %v2586_v21 }
 0x38f   :  { %v2280_v55 = vpack.i.bf16 %v1821_v46, %v1719_v36  ;;  %v1838_v16 = vcombine.high %v1814_v48, %v2437_v4  ;;  %v1830_v3 = vrot.slane %v1822_v44, %v2586_v21  ;;  %v1839_v47 = vcombine.high %v1821_v46, %v2437_v4 }
 0x390   :  { %v1837_v50 = vrot.slane %v1823_v45, %v2586_v21 }
 0x391   :  { %2281 = vrot.lane.b32.xlu0 %v2280_v55, %s2441_s2  ;;  %v2285_v52 = vpack.i.bf16 %v1838_v16, %v1736_v49  ;;  %v2295_v56 = vpack.i.bf16 %v1830_v3, %v1728_v43  ;;  %v2290_v28 = vpack.i.bf16 %v1839_v47, %v1737_v53  ;;  %v1840_v57 = vcombine.high %v1830_v3, %v2437_v4 }
 0x392   :  { %v2305_v58 = vpack.i.bf16 %v1837_v50, %v1735_v54  ;;  %v1841_v60 = vcombine.high %v1837_v50, %v2437_v4 }
 0x393   :  { %2286 = vrot.lane.b32.xlu1 %v2285_v52, %s2431_s29  ;;  %v2300_v61 = vpack.i.bf16 %v1840_v57, %v1738_v51  ;;  %s2448_s29 = smov [#allocation8]  }
 0x394   :  { %v2310_v37 = vpack.i.bf16 %v1841_v60, %v1739_v59  ;;  %s2007_s14 = sshll.u32 %s2448_s29, 4  ;;  %s2008_s14 = int_to_ptr.vmem [resolvable:$true] %s2007_s14 }
 0x395   :  { %2296 = vrot.lane.b32.xlu0 %v2295_v56, %s2443_s10  ;;  %s2401_s15 = scalar_lea.vmem %s2008_s14, 64  ;;  %p2406_p11 = scmp.lt.s32.totalorder %s2008_s14, %s2008_s14 }
 0x396   :  { %p2402_p10 = scmp.ne.s32.totalorder %s2008_s14, %s2401_s15  ;;  %p2407_p12 = scmp.lt.s32.totalorder %s2401_s15, %s2401_s15 }
 0x397   :  { %2291 = vrot.lane.b32.xlu1 %v2290_v28, %s2442_s3 }
 0x398   :  { %p2408_p13 = por %p2407_p12, %p2406_p11 }
 0x399   :  { %2306 = vrot.lane.b32.xlu0 %v2305_v58, %s2445_s12 }
 0x39a   :  { %p2409_p0 = pnand %p2408_p13, %p2402_p10 }
 0x39b   :  { %2301 = vrot.lane.b32.xlu1 %v2300_v61, %s2444_s11 }
 0x39f   :  { %2311 = vrot.lane.b32.xlu1 %v2310_v37, %s2446_s13 }
 0x403   :  { %v2282_v21 = vpop.permute.xlu0 %2281 }
 0x404   :  { %v2284_v5 = vunpack.i.h.bf16 %v2282_v21  ;;  %v2283_v7 = vunpack.i.l.bf16 %v2282_v21 }
 0x405   :  { %v2287_v62 = vpop.permute.xlu1 %2286 }
 0x406   :  { %v2289_v63 = vunpack.i.h.bf16 %v2287_v62  ;;  %v2288_v0 = vunpack.i.l.bf16 %v2287_v62 }
 0x407   :  { %v2297_v2 = vpop.permute.xlu0 %2296 }
 0x408   :  { %v1870_v4 = vsel %vm821_vm2, %v1814_v48, %v2289_v63  ;;  %v1768_v1 = vsel %vm821_vm2, %v1712_v38, %v2288_v0  ;;  %v2299_v15 = vunpack.i.h.bf16 %v2297_v2  ;;  %v2298_v18 = vunpack.i.l.bf16 %v2297_v2 }
 0x409   :  { %v2292_v8 = vpop.permute.xlu1 %2291  ;;  %v1769_v11 = vsel %vm82_vm0, %v1768_v1, %v2283_v7  ;;  %v1871_v12 = vsel %vm82_vm0, %v1870_v4, %v2284_v5 }
 0x40a   :  { %v2294_v9 = vunpack.i.h.bf16 %v2292_v8  ;;  %v2293_v10 = vunpack.i.l.bf16 %v2292_v8 }
 0x40b   :  { %v2307_v20 = vpop.permute.xlu0 %2306 }
 0x40c   :  { %v1770_v13 = vsel %vm824_vm3, %v1769_v11, %v2293_v10  ;;  %v1872_v14 = vsel %vm824_vm3, %v1871_v12, %v2294_v9  ;;  %v2309_v29 = vunpack.i.h.bf16 %v2307_v20  ;;  %v2308_v30 = vunpack.i.l.bf16 %v2307_v20 }
 0x40d   :  { %v2302_v19 = vpop.permute.xlu1 %2301  ;;  %v1771_v24 = vsel %vm826_vm4, %v1770_v13, %v2298_v18  ;;  %v1873_v25 = vsel %vm826_vm4, %v1872_v14, %v2299_v15 }
 0x40e   :  { %v2304_v22 = vunpack.i.h.bf16 %v2302_v19  ;;  %v2303_v23 = vunpack.i.l.bf16 %v2302_v19 }
 0x410   :  { %v1874_v26 = vsel %vm828_vm5, %v1873_v25, %v2304_v22  ;;  %v1772_v27 = vsel %vm828_vm5, %v1771_v24, %v2303_v23 }
 0x411   :  { %v2312_v31 = vpop.permute.xlu1 %2311  ;;  %v1773_v6 = vsel %vm830_vm6, %v1772_v27, %v2308_v30  ;;  %v1875_v34 = vsel %vm830_vm6, %v1874_v26, %v2309_v29 }
 0x412   :  { %v2314_v32 = vunpack.i.h.bf16 %v2312_v31  ;;  %v2313_v33 = vunpack.i.l.bf16 %v2312_v31 }
 0x414   :  { %v1774_v35 = vsel %vm832_vm7, %v1773_v6, %v2313_v33  ;;  %v1876_v36 = vsel %vm832_vm7, %v1875_v34, %v2314_v32 }
 0x415   :  { %v1775_v38 = vpack.c.bf16 %v1774_v35, %v1774_v35  ;;  %v1877_v39 = vpack.c.bf16 %v1876_v36, %v1876_v36 }
 0x417   :  { %2201 = vmatmul.mubr.msk.bf16.vlgmr.msra.gmra.mrb[20].mxu0 %vm961_vm8, %v1775_v38  ;;  %2213 = vmatmul.mubr.msk.bf16.vlgmr.msra.gmra.mrb[16].mxu1 %vm961_vm8, %v1877_v39 }
 0x4ea   :  { %v1915_v40 = vpop.f32.mrb[20].mxu0  ;;  %v1958_v41 = vpop.f32.mrb[16].mxu1 }
 0x4eb   :  { %v1964_v42 = vmul.f32 %v1915_v40, %v1915_v40  ;;  %v1965_v43 = vmul.f32 %v1958_v41, %v1958_v41  ;;  %v2202_v44 = vpop.f32.mrb[21].mxu0  ;;  %v2214_v45 = vpop.f32.mrb[17].mxu1 }
 0x4ec   :  { %v1918_v46 = vpop.f32.mrb[22].mxu0  ;;  %v1961_v48 = vpop.f32.mrb[18].mxu1 }
 0x4ed   :  { %v1966_v49 = vadd.f32 %v1965_v43, %v1964_v42  ;;  %v2203_v53 = vpop.f32.mrb[23].mxu0  ;;  %v2215_v54 = vpop.f32.mrb[19].mxu1 }
 0x4ef   :  { %2333 = vrsqrt.f32 %v1966_v49  ;;  %vm1969_vm11 = vcmp.eq.f32.partialorder %v1966_v49, inf  ;;  %v1972_v3 = vand.u32 2147483648, %v1966_v49  ;;  %vm1971_vm12 = vcmp.eq.f32.partialorder %v1966_v49, 0.0 }
 0x4f9   :  { %v2334_v55 = vpop.eup %2333 }
 0x4fa   :  { %v1968_v16 = vmul.f32 %v2334_v55, %v1966_v49 }
 0x4fc   :  { %v1970_v47 = vsel %vm1969_vm11, %v1966_v49, %v1968_v16 }
 0x4fd   :  { %v1973_v50 = vsel %vm1971_vm12, %v1972_v3, %v1970_v47 }
 0x4fe   :  { %v1974_v51 = vmul.f32 0.11111111, %v1973_v50 }
 0x500   :  { %v1982_v52 = vrot.slane %v1974_v51, %v2712_v17 }
 0x502   :  { %v1983_v56 = vcombine.high %v1982_v52, %v1982_v52  ;;  %2034 = vst.sshfl [vmem:[#allocation8 + $0x1] sm:$0x1 pattern:$0x73625140] %v1982_v52 }
 0x504   :  { %2035 = vst.sshfl [vmem:[#allocation8 + $0x3] sm:$0x1 pattern:$0x73625140] %v1983_v56 }
 0x505   :  { %2412 = shalt.err (!%p2409_p0)
}
 0x506   :  { %s2413_s17 = scalar_lea.hbm %s2780_s5, 64 }
 0x507   :  { %p2414_p1 = scmp.ne.s32.totalorder %s2780_s5, %s2413_s17  ;;  %p2417_p2 = scmp.lt.u32.totalorder %s2413_s17, %s2780_s5 }
 0x509   :  { %p2419_p3 = pnand %p2417_p2, %p2414_p1 }
 0x50b   :  { %2422 = shalt.err (!%p2419_p3)
}
 0x50c   :  { %s2449_s22 = smov 2  }
 0x50d   :  { %2013 = dma.vmem_to_hbm [thread:$0]  %s2008_s14, 64, %s2780_s5, [#allocation4], %s2443_s10, %s2443_s10, %s2449_s22  }
 0x50e   :  { %2427 = dma.done.wait [#allocation4], 64  }
 0x50f   :  { %2428 = vsyncadd [#allocation4], 4294967232 }
 0x510   :  { %2017 = vsyncpa [#allocation3], 1 }
 0x511   :  { %2018 = vsyncpa [#allocation6], 1 }
 0x512   :  { %2019 = vsyncpa [#allocation4], 1 }

</bundles_post_ra>
